<compile_context>
chip_gen: v6e
topology: v6e:2x2x1
jax: 0.10.0
libtpu: 0.0.40
codegen_flags: <defaults>
</compile_context>

<pallas_src>
import functools

import numpy as np
import jax
import jax.numpy as jnp
from jax import lax
from jax.experimental import pallas as pl
from jax.experimental.pallas import tpu as pltpu


def _round_up(x, m):
    return (x + m - 1) // m * m


def _grid_sample_kernel(pts_ref, vol_ref, out_ref, *, resolution):
    """pts_ref: (1, 3, TM) f32; vol_ref: (1, C*R*R, R) native; out_ref: (1, C, TM)."""
    R = resolution
    pts = pts_ref[0]                     # (3, TM) f32
    x = pts[0, :]                        # indexes W (innermost spatial dim)
    y = pts[1, :]                        # indexes H
    z = pts[2, :]                        # indexes D

    def unnormalize(c):
        # align_corners=True unnormalization + border clamp of the coordinate.
        c = (c + 1.0) * 0.5 * (R - 1)
        return jnp.clip(c, 0.0, float(R - 1))

    ix = unnormalize(x)
    iy = unnormalize(y)
    iz = unnormalize(z)

    ix0f = jnp.floor(ix); iy0f = jnp.floor(iy); iz0f = jnp.floor(iz)
    fx = ix - ix0f; fy = iy - iy0f; fz = iz - iz0f
    ix0 = ix0f.astype(jnp.int32); iy0 = iy0f.astype(jnp.int32); iz0 = iz0f.astype(jnp.int32)
    ix1 = jnp.minimum(ix0 + 1, R - 1)
    iy1 = jnp.minimum(iy0 + 1, R - 1)
    iz1 = jnp.minimum(iz0 + 1, R - 1)

    tm = pts.shape[1]
    iota_r = lax.broadcasted_iota(jnp.int32, (R, tm), 0)

    def axis_weights(i0, i1, f):
        # (R, TM) per-axis one-hot weight matrix, single write pass.  When the
        # border clamp makes i0 == i1 the two contributions land on the same
        # row and sum to 1, matching padding_mode='border'.
        return (jnp.where(iota_r == i0[None, :], 1.0 - f[None, :], 0.0)
                + jnp.where(iota_r == i1[None, :], f[None, :], 0.0))

    ox = axis_weights(ix0, ix1, fx)      # (R, TM)  x axis
    oy = axis_weights(iy0, iy1, fy)      # (R, TM)  y axis
    oz = axis_weights(iz0, iz1, fz)      # (R, TM)  z axis

    # Stage 1 (MXU): contract the x axis. Rows of `vol` enumerate (c, z, y).
    vol = vol_ref[0]                                          # (C*R*R, R), native dtype
    t = jnp.dot(vol, ox.astype(vol.dtype),
                preferred_element_type=jnp.float32)           # (C*R*R, TM) f32
    C = vol.shape[0] // (R * R)
    t = t.reshape(C, R * R, tm)                               # (C, Rz*Ry, TM)

    # Stage 2 (VPU/XLU): combined z*y weight, multiply and reduce.
    ozy = (oz[:, None, :] * oy[None, :, :]).reshape(R * R, tm)   # (Rz*Ry, TM)
    out = jnp.sum(t * ozy[None, :, :], axis=1)                   # (C, TM)

    out_ref[0] = out.astype(out_ref.dtype)


def feature_volume_embedding(points, feature_volume, *, tile_m=512):
    """points: (B, M, 3) in [-1, 1]; feature_volume: (B, C, R, R, R) -> (B, C, M)."""
    assert points.ndim == 3 and points.shape[-1] == 3
    assert feature_volume.ndim == 5
    assert feature_volume.shape[2] == feature_volume.shape[3] == feature_volume.shape[4]
    B, M, _ = points.shape
    _, C, R, _, _ = feature_volume.shape

    # Lane-major point layout (B, 3, M); coordinate math kept in f32.
    # TODO(synk): accept a (B, 3, M) layout directly from the caller to avoid
    # this XLA transpose for very large M.
    pts_t = jnp.transpose(points, (0, 2, 1)).astype(jnp.float32)

    # Keep the feature volume in its native dtype (halves DMA for bf16 inputs).
    # Pure reshape -- rows enumerate (c, z, y), the last dim is x -- no copy.
    vol2d = feature_volume.reshape(B, C * R * R, R)

    # Large lane-dense point tiles amortize per-step pipeline overhead and give
    # wide unmasked stores; pad M to a tile multiple and slice the result back.
    tm = min(_round_up(tile_m, 128), _round_up(M, 128))
    m_pad = _round_up(M, tm)
    if m_pad != M:
        pts_t = jnp.pad(pts_t, ((0, 0), (0, 0), (0, m_pad - M)))

    kernel = functools.partial(_grid_sample_kernel, resolution=R)
    out = pl.pallas_call(
        kernel,
        out_shape=jax.ShapeDtypeStruct((B, C, m_pad), feature_volume.dtype),
        grid_spec=pltpu.PrefetchScalarGridSpec(
            num_scalar_prefetch=0,
            grid=(B, m_pad // tm),
            in_specs=[
                pl.BlockSpec((1, 3, tm), lambda b, m: (b, 0, m)),
                # Volume block index is constant along m, so it is only
                # re-fetched when the batch index changes.
                # TODO(synk): on v7x (64 MiB VMEM) single-buffer this operand
                # via pipeline_mode=pl.Buffered(1) and add an extra
                # 'arbitrary' reduction axis chunking R^3 for R >= 32.
                pl.BlockSpec((1, C * R * R, R), lambda b, m: (b, 0, 0)),
            ],
            out_specs=pl.BlockSpec((1, C, tm), lambda b, m: (b, 0, m)),
        ),
        compiler_params=pltpu.CompilerParams(
            # B parallel / m arbitrary: megacore (v7x) shards batches across
            # TensorCores so each core DMAs a distinct feature volume.
            dimension_semantics=("parallel", "arbitrary"),
            vmem_limit_bytes=64 * 1024 * 1024,
        ),
    )(pts_t, vol2d)

    if m_pad != M:
        out = out[:, :, :M]
    return out


def _reference(points, feature_volume):
    """Pure-JAX trilinear grid_sample(align_corners=True, border) reference."""
    B, M, _ = points.shape
    _, C, R, _, _ = feature_volume.shape
    vol_flat = feature_volume.reshape(B, C, R * R * R).astype(jnp.float32)

    coord = jnp.clip((points.astype(jnp.float32) + 1.0) * 0.5 * (R - 1), 0.0, R - 1.0)
    ix, iy, iz = coord[..., 0], coord[..., 1], coord[..., 2]
    ix0 = jnp.floor(ix); iy0 = jnp.floor(iy); iz0 = jnp.floor(iz)
    fx, fy, fz = ix - ix0, iy - iy0, iz - iz0
    ix0 = ix0.astype(jnp.int32); iy0 = iy0.astype(jnp.int32); iz0 = iz0.astype(jnp.int32)
    ix1 = jnp.minimum(ix0 + 1, R - 1)
    iy1 = jnp.minimum(iy0 + 1, R - 1)
    iz1 = jnp.minimum(iz0 + 1, R - 1)

    def gather(zc, yc, xc):
        idx = zc * (R * R) + yc * R + xc                      # (B, M)
        return jax.vmap(lambda v, i: v[:, i])(vol_flat, idx)  # (B, C, M)

    def w(a):
        return a[:, None, :]

    out = (gather(iz0, iy0, ix0) * w((1 - fz) * (1 - fy) * (1 - fx))
           + gather(iz0, iy0, ix1) * w((1 - fz) * (1 - fy) * fx)
           + gather(iz0, iy1, ix0) * w((1 - fz) * fy * (1 - fx))
           + gather(iz0, iy1, ix1) * w((1 - fz) * fy * fx)
           + gather(iz1, iy0, ix0) * w(fz * (1 - fy) * (1 - fx))
           + gather(iz1, iy0, ix1) * w(fz * (1 - fy) * fx)
           + gather(iz1, iy1, ix0) * w(fz * fy * (1 - fx))
           + gather(iz1, iy1, ix1) * w(fz * fy * fx))
    return out.astype(feature_volume.dtype)


if __name__ == "__main__":
    key = jax.random.PRNGKey(0)
    k_pts, k_vol = jax.random.split(key)

    B, C, R, M = 2, 4, 8, 500   # M not a tile multiple -> exercises padding path
    points = jax.random.uniform(k_pts, (B, M, 3), jnp.float32, minval=-1.0, maxval=1.0)
    feature_volume = jax.random.normal(k_vol, (B, C, R, R, R), jnp.float32)

    out = feature_volume_embedding(points, feature_volume)
    out = jax.block_until_ready(out)
    assert out.shape == (B, C, M), out.shape

    ref = _reference(points, feature_volume)
    np.testing.assert_allclose(np.asarray(out), np.asarray(ref), rtol=1e-4, atol=1e-4)

    print("KERNEL_OK")
</pallas_src>

<mosaic_0001>
module attributes {stable_mosaic.version = 11 : i64} {
  func.func @_grid_sample_kernel(%arg0: i32, %arg1: i32, %arg2: memref<1x3x512xf32, #tpu.memory_space<vmem>>, %arg3: memref<1x256x8xf32, #tpu.memory_space<vmem>>, %arg4: memref<1x4x512xf32, #tpu.memory_space<vmem>>) attributes {dimension_semantics = [#tpu.dimension_semantics<parallel>, #tpu.dimension_semantics<arbitrary>], iteration_bounds = array<i64: 2, 1>, scalar_prefetch = 0 : i64, scratch_operands = 0 : i64, tpu.core_type = #tpu.core_type<tc>, window_params = [{transform_indices = @transform_0, window_bounds = array<i64: 1, 3, 512>}, {transform_indices = @transform_1, window_bounds = array<i64: 1, 256, 8>}, {transform_indices = @transform_2, window_bounds = array<i64: 1, 4, 512>}]} {
    %c0 = arith.constant 0 : index
    %c0_0 = arith.constant 0 : index
    %c0_1 = arith.constant 0 : index
    %0 = vector.load %arg2[%c0, %c0_0, %c0_1] : memref<1x3x512xf32, #tpu.memory_space<vmem>>, vector<1x3x512xf32>
    %1 = vector.shape_cast %0 : vector<1x3x512xf32> to vector<3x512xf32>
    %2 = vector.extract_strided_slice %1 {offsets = [0, 0], sizes = [1, 512], strides = [1, 1]} : vector<3x512xf32> to vector<1x512xf32>
    %3 = vector.shape_cast %2 : vector<1x512xf32> to vector<512xf32>
    %4 = vector.extract_strided_slice %1 {offsets = [1, 0], sizes = [1, 512], strides = [1, 1]} : vector<3x512xf32> to vector<1x512xf32>
    %5 = vector.shape_cast %4 : vector<1x512xf32> to vector<512xf32>
    %6 = vector.extract_strided_slice %1 {offsets = [2, 0], sizes = [1, 512], strides = [1, 1]} : vector<3x512xf32> to vector<1x512xf32>
    %7 = vector.shape_cast %6 : vector<1x512xf32> to vector<512xf32>
    %cst = arith.constant 1.000000e+00 : f32
    %8 = vector.broadcast %cst : f32 to vector<512xf32>
    %9 = arith.addf %3, %8 : vector<512xf32>
    %cst_2 = arith.constant 5.000000e-01 : f32
    %10 = vector.broadcast %cst_2 : f32 to vector<512xf32>
    %11 = arith.mulf %9, %10 : vector<512xf32>
    %cst_3 = arith.constant 7.000000e+00 : f32
    %12 = vector.broadcast %cst_3 : f32 to vector<512xf32>
    %13 = arith.mulf %11, %12 : vector<512xf32>
    %cst_4 = arith.constant 0.000000e+00 : f32
    %cst_5 = arith.constant 7.000000e+00 : f32
    %14 = vector.broadcast %cst_4 : f32 to vector<512xf32>
    %15 = arith.maximumf %14, %13 : vector<512xf32>
    %16 = vector.broadcast %cst_5 : f32 to vector<512xf32>
    %17 = arith.minimumf %16, %15 : vector<512xf32>
    %cst_6 = arith.constant 1.000000e+00 : f32
    %18 = vector.broadcast %cst_6 : f32 to vector<512xf32>
    %19 = arith.addf %5, %18 : vector<512xf32>
    %cst_7 = arith.constant 5.000000e-01 : f32
    %20 = vector.broadcast %cst_7 : f32 to vector<512xf32>
    %21 = arith.mulf %19, %20 : vector<512xf32>
    %cst_8 = arith.constant 7.000000e+00 : f32
    %22 = vector.broadcast %cst_8 : f32 to vector<512xf32>
    %23 = arith.mulf %21, %22 : vector<512xf32>
    %cst_9 = arith.constant 0.000000e+00 : f32
    %cst_10 = arith.constant 7.000000e+00 : f32
    %24 = vector.broadcast %cst_9 : f32 to vector<512xf32>
    %25 = arith.maximumf %24, %23 : vector<512xf32>
    %26 = vector.broadcast %cst_10 : f32 to vector<512xf32>
    %27 = arith.minimumf %26, %25 : vector<512xf32>
    %cst_11 = arith.constant 1.000000e+00 : f32
    %28 = vector.broadcast %cst_11 : f32 to vector<512xf32>
    %29 = arith.addf %7, %28 : vector<512xf32>
    %cst_12 = arith.constant 5.000000e-01 : f32
    %30 = vector.broadcast %cst_12 : f32 to vector<512xf32>
    %31 = arith.mulf %29, %30 : vector<512xf32>
    %cst_13 = arith.constant 7.000000e+00 : f32
    %32 = vector.broadcast %cst_13 : f32 to vector<512xf32>
    %33 = arith.mulf %31, %32 : vector<512xf32>
    %cst_14 = arith.constant 0.000000e+00 : f32
    %cst_15 = arith.constant 7.000000e+00 : f32
    %34 = vector.broadcast %cst_14 : f32 to vector<512xf32>
    %35 = arith.maximumf %34, %33 : vector<512xf32>
    %36 = vector.broadcast %cst_15 : f32 to vector<512xf32>
    %37 = arith.minimumf %36, %35 : vector<512xf32>
    %38 = math.floor %17 : vector<512xf32>
    %39 = math.floor %27 : vector<512xf32>
    %40 = math.floor %37 : vector<512xf32>
    %41 = arith.subf %17, %38 : vector<512xf32>
    %42 = arith.subf %27, %39 : vector<512xf32>
    %43 = arith.subf %37, %40 : vector<512xf32>
    %44 = arith.fptosi %38 : vector<512xf32> to vector<512xi32>
    %45 = arith.fptosi %39 : vector<512xf32> to vector<512xi32>
    %46 = arith.fptosi %40 : vector<512xf32> to vector<512xi32>
    %c1_i32 = arith.constant 1 : i32
    %47 = vector.broadcast %c1_i32 : i32 to vector<512xi32>
    %48 = arith.addi %44, %47 : vector<512xi32>
    %c7_i32 = arith.constant 7 : i32
    %49 = vector.broadcast %c7_i32 : i32 to vector<512xi32>
    %50 = arith.minsi %48, %49 : vector<512xi32>
    %c1_i32_16 = arith.constant 1 : i32
    %51 = vector.broadcast %c1_i32_16 : i32 to vector<512xi32>
    %52 = arith.addi %45, %51 : vector<512xi32>
    %c7_i32_17 = arith.constant 7 : i32
    %53 = vector.broadcast %c7_i32_17 : i32 to vector<512xi32>
    %54 = arith.minsi %52, %53 : vector<512xi32>
    %c1_i32_18 = arith.constant 1 : i32
    %55 = vector.broadcast %c1_i32_18 : i32 to vector<512xi32>
    %56 = arith.addi %46, %55 : vector<512xi32>
    %c7_i32_19 = arith.constant 7 : i32
    %57 = vector.broadcast %c7_i32_19 : i32 to vector<512xi32>
    %58 = arith.minsi %56, %57 : vector<512xi32>
    %59 = tpu.iota {dimensions = array<i32: 0>} : vector<8x512xi32>
    %60 = vector.shape_cast %44 : vector<512xi32> to vector<1x512xi32>
    %61 = vector.broadcast %60 : vector<1x512xi32> to vector<8x512xi32>
    %62 = arith.cmpi eq, %59, %61 : vector<8x512xi32>
    %63 = vector.shape_cast %41 : vector<512xf32> to vector<1x512xf32>
    %cst_20 = arith.constant 1.000000e+00 : f32
    %64 = vector.broadcast %cst_20 : f32 to vector<1x512xf32>
    %65 = arith.subf %64, %63 : vector<1x512xf32>
    %cst_21 = arith.constant 0.000000e+00 : f32
    %66 = vector.shape_cast %65 : vector<1x512xf32> to vector<1x512xf32>
    %67 = vector.broadcast %66 : vector<1x512xf32> to vector<8x512xf32>
    %68 = vector.broadcast %cst_21 : f32 to vector<8x512xf32>
    %69 = arith.select %62, %67, %68 : vector<8x512xi1>, vector<8x512xf32>
    %70 = vector.shape_cast %50 : vector<512xi32> to vector<1x512xi32>
    %71 = vector.broadcast %70 : vector<1x512xi32> to vector<8x512xi32>
    %72 = arith.cmpi eq, %59, %71 : vector<8x512xi32>
    %73 = vector.shape_cast %41 : vector<512xf32> to vector<1x512xf32>
    %cst_22 = arith.constant 0.000000e+00 : f32
    %74 = vector.shape_cast %73 : vector<1x512xf32> to vector<1x512xf32>
    %75 = vector.broadcast %74 : vector<1x512xf32> to vector<8x512xf32>
    %76 = vector.broadcast %cst_22 : f32 to vector<8x512xf32>
    %77 = arith.select %72, %75, %76 : vector<8x512xi1>, vector<8x512xf32>
    %78 = arith.addf %69, %77 : vector<8x512xf32>
    %79 = vector.shape_cast %45 : vector<512xi32> to vector<1x512xi32>
    %80 = vector.broadcast %79 : vector<1x512xi32> to vector<8x512xi32>
    %81 = arith.cmpi eq, %59, %80 : vector<8x512xi32>
    %82 = vector.shape_cast %42 : vector<512xf32> to vector<1x512xf32>
    %cst_23 = arith.constant 1.000000e+00 : f32
    %83 = vector.broadcast %cst_23 : f32 to vector<1x512xf32>
    %84 = arith.subf %83, %82 : vector<1x512xf32>
    %cst_24 = arith.constant 0.000000e+00 : f32
    %85 = vector.shape_cast %84 : vector<1x512xf32> to vector<1x512xf32>
    %86 = vector.broadcast %85 : vector<1x512xf32> to vector<8x512xf32>
    %87 = vector.broadcast %cst_24 : f32 to vector<8x512xf32>
    %88 = arith.select %81, %86, %87 : vector<8x512xi1>, vector<8x512xf32>
    %89 = vector.shape_cast %54 : vector<512xi32> to vector<1x512xi32>
    %90 = vector.broadcast %89 : vector<1x512xi32> to vector<8x512xi32>
    %91 = arith.cmpi eq, %59, %90 : vector<8x512xi32>
    %92 = vector.shape_cast %42 : vector<512xf32> to vector<1x512xf32>
    %cst_25 = arith.constant 0.000000e+00 : f32
    %93 = vector.shape_cast %92 : vector<1x512xf32> to vector<1x512xf32>
    %94 = vector.broadcast %93 : vector<1x512xf32> to vector<8x512xf32>
    %95 = vector.broadcast %cst_25 : f32 to vector<8x512xf32>
    %96 = arith.select %91, %94, %95 : vector<8x512xi1>, vector<8x512xf32>
    %97 = arith.addf %88, %96 : vector<8x512xf32>
    %98 = vector.shape_cast %46 : vector<512xi32> to vector<1x512xi32>
    %99 = vector.broadcast %98 : vector<1x512xi32> to vector<8x512xi32>
    %100 = arith.cmpi eq, %59, %99 : vector<8x512xi32>
    %101 = vector.shape_cast %43 : vector<512xf32> to vector<1x512xf32>
    %cst_26 = arith.constant 1.000000e+00 : f32
    %102 = vector.broadcast %cst_26 : f32 to vector<1x512xf32>
    %103 = arith.subf %102, %101 : vector<1x512xf32>
    %cst_27 = arith.constant 0.000000e+00 : f32
    %104 = vector.shape_cast %103 : vector<1x512xf32> to vector<1x512xf32>
    %105 = vector.broadcast %104 : vector<1x512xf32> to vector<8x512xf32>
    %106 = vector.broadcast %cst_27 : f32 to vector<8x512xf32>
    %107 = arith.select %100, %105, %106 : vector<8x512xi1>, vector<8x512xf32>
    %108 = vector.shape_cast %58 : vector<512xi32> to vector<1x512xi32>
    %109 = vector.broadcast %108 : vector<1x512xi32> to vector<8x512xi32>
    %110 = arith.cmpi eq, %59, %109 : vector<8x512xi32>
    %111 = vector.shape_cast %43 : vector<512xf32> to vector<1x512xf32>
    %cst_28 = arith.constant 0.000000e+00 : f32
    %112 = vector.shape_cast %111 : vector<1x512xf32> to vector<1x512xf32>
    %113 = vector.broadcast %112 : vector<1x512xf32> to vector<8x512xf32>
    %114 = vector.broadcast %cst_28 : f32 to vector<8x512xf32>
    %115 = arith.select %110, %113, %114 : vector<8x512xi1>, vector<8x512xf32>
    %116 = arith.addf %107, %115 : vector<8x512xf32>
    %c0_29 = arith.constant 0 : index
    %c0_30 = arith.constant 0 : index
    %c0_31 = arith.constant 0 : index
    %117 = vector.load %arg3[%c0_29, %c0_30, %c0_31] : memref<1x256x8xf32, #tpu.memory_space<vmem>>, vector<1x256x8xf32>
    %118 = vector.shape_cast %117 : vector<1x256x8xf32> to vector<256x8xf32>
    %cst_32 = arith.constant dense<0.000000e+00> : vector<256x512xf32>
    %119 = tpu.matmul %118, %78, %cst_32 {dimension_numbers = #tpu.dot_dimension_numbers<[1], [0], [0], [1], [0, 0, 1, 1], [], []>} : vector<256x8xf32>, vector<8x512xf32>, vector<256x512xf32> -> vector<256x512xf32>
    %120 = vector.shape_cast %119 : vector<256x512xf32> to vector<4x64x512xf32>
    %121 = vector.shape_cast %116 : vector<8x512xf32> to vector<8x1x512xf32>
    %122 = vector.shape_cast %97 : vector<8x512xf32> to vector<1x8x512xf32>
    %123 = vector.broadcast %121 : vector<8x1x512xf32> to vector<8x8x512xf32>
    %124 = vector.broadcast %122 : vector<1x8x512xf32> to vector<8x8x512xf32>
    %125 = arith.mulf %123, %124 : vector<8x8x512xf32>
    %126 = vector.shape_cast %125 : vector<8x8x512xf32> to vector<64x512xf32>
    %127 = vector.shape_cast %126 : vector<64x512xf32> to vector<1x64x512xf32>
    %128 = vector.broadcast %127 : vector<1x64x512xf32> to vector<4x64x512xf32>
    %129 = arith.mulf %120, %128 : vector<4x64x512xf32>
    %cst_33 = arith.constant dense<0.000000e+00> : vector<4x512xf32>
    %130 = vector.multi_reduction <add>, %129, %cst_33 [1] : vector<4x64x512xf32> to vector<4x512xf32>
    %c0_34 = arith.constant 0 : index
    %c0_35 = arith.constant 0 : index
    %c0_36 = arith.constant 0 : index
    %131 = vector.load %arg4[%c0_34, %c0_35, %c0_36] : memref<1x4x512xf32, #tpu.memory_space<vmem>>, vector<1x4x512xf32>
    %132 = vector.shape_cast %131 : vector<1x4x512xf32> to vector<4x512xf32>
    %133 = vector.shape_cast %130 : vector<4x512xf32> to vector<1x4x512xf32>
    tpu.vector_store %arg4[%c0_34, %c0_35, %c0_36], %133 {strides = array<i32>} : memref<1x4x512xf32, #tpu.memory_space<vmem>>, vector<1x4x512xf32>,
    return
  }
  func.func @transform_0(%arg0: i32, %arg1: i32) -> (i32, i32, i32) {
    %c0_i32 = arith.constant 0 : i32
    %c0_i32_0 = arith.constant 0 : i32
    return %arg0, %c0_i32, %arg1 : i32, i32, i32
  }
  func.func @transform_1(%arg0: i32, %arg1: i32) -> (i32, i32, i32) {
    %c0_i32 = arith.constant 0 : i32
    %c0_i32_0 = arith.constant 0 : i32
    %c0_i32_1 = arith.constant 0 : i32
    return %arg0, %c0_i32, %c0_i32_0 : i32, i32, i32
  }
  func.func @transform_2(%arg0: i32, %arg1: i32) -> (i32, i32, i32) {
    %c0_i32 = arith.constant 0 : i32
    %c0_i32_0 = arith.constant 0 : i32
    return %arg0, %c0_i32, %arg1 : i32, i32, i32
  }
}

</mosaic_0001>

<bundles_post_ra>
// kernel: tpu_custom_call.1
= control target key start
LH: loop header
LB: loop body
LE: loop exit
PB: predicated region body
PF: predicated region fallthrough
CT: control target
= control target key end

     0   :  { %7 = vsyncpa [#allocation3], 0  ;;  %s3151_s0 = inlined_call_operand.vmem [shape: f32[2,3,512], index: 0, kind: input, shape index: {}]   ;;  %s3152_s1 = inlined_call_operand.vmem [shape: f32[2,256,8], index: 1, kind: input, shape index: {}]   ;;  %s3153_s2 = inlined_call_operand.hbm [shape: f32[2,4,512], index: 2, kind: output, shape index: {}]  }
   0x1   :  { %9 = vsyncpa [#allocation3 + $0x1], 0  ;;  %s2332_s9 = smov 0   ;;  %s2334_s10 = smov 0  }
   0x2   :  { %s2336_s11 = smov 0   ;;  %s2338_s12 = smov 0  }
   0x3   :  { %s2340_s13 = smov 0   ;;  %s2342_s14 = smov 0  }
   0x4 LB: > { %s2093_s15 = sadd.s32 4294967295, %s2312_s14   ;;  %s2094_s16 = sadd.s32 4294967294, %s2312_s14   ;;  %s2312_s14 = sphi %s2342_s14, %s15_s14   ;;  %s2308_s13 = sphi %s2340_s13, %s3197_s13   ;;  %s2304_s12 = sphi %s2338_s12, %s3196_s12   ;;  %s2300_s11 = sphi %s2336_s11, %s3195_s11   ;;  %s2296_s10 = sphi %s2334_s10, %s3194_s10   ;;  %s2292_s9 = sphi %s2332_s9, %s3193_s9  }
   0x5   : > { %s27_s17 = sadd.s32 1, %s2308_s13  ;;  %s90_s18 = sadd.s32 1, %s2300_s11 }
   0x6   : > { %p29_p0 = scmp.ge.s32.totalorder %s27_s17, 2  ;;  %p100_p1 = scmp.ne.s32.totalorder %s2300_s11, %s2296_s10 }
   0x7   : > { %p101_p2 = scmp.eq.s32.totalorder %s2093_s15, 1  ;;  %p106_p3 = scmp.ne.s32.totalorder %s2296_s10, %s2292_s9 }
   0x8   : > { %s3199_s17 = smov (%p29_p0, %s27_s17), 0  ;;  %p107_p5 = scmp.eq.s32.totalorder %s2094_s16, 1 }
   0x9   : > { %p2372_p4 = por %p101_p2, %p100_p1  ;;  %s85_s20 = ssub.s32 %s2308_s13, %s3199_s17 }
   0xa   : > { %p2097_p6 = scmp.ge.s32.totalorder %s2312_s14, 1  ;;  %p88_p7 = scmp.eq.s32.totalorder %s85_s20, 0 }
   0xb   : > { %p2379_p8 = por %p107_p5, %p106_p3  ;;  %p146_p9 = scmp.lt.s32.totalorder %s2312_s14, 3 }
   0xc   : > { %s2385_s22 = scalar_select %p88_p7, %s2300_s11, %s90_s18  }
   0xd   : > { %p147_p10 = pnand %p2097_p6, %p146_p9 }
   0xf   : > { %150 = sbr.rel (%p147_p10) target bundleno = 415 (0x19f), region = 28 }
  0x14   : > { %p178_p11 = scmp.lt.s32.totalorder %s2304_s12, 1  ;;  %v2314_v0 = vmov 0.0   ;;  %v217_v6 = vlaneseq  ;;  %vm725_vm9 = vcmask 64512   ;;  %s174_s4 = sand.u32 1, %s2296_s10  }
  0x15   : > { %886 = vmatprep.mubr.f32.mxu0 %v2314_v0  ;;  %1143 = vmatprep.mubr.f32.mxu1 %v2314_v0  ;;  %s2098_s5 = sshll.u32 %s174_s4, 4  ;;  %s2174_s6 = sshll.u32 %s2304_s12, 8 }
  0x16   : > { %s2391_s23 = scalar_select %p178_p11, %s2304_s12, 1  ;;  %v2397_v11 = vshrl.u32 %v217_v6, 7 }
  0x17   : > { %s176_s7 = scalar_lea.vmem [#allocation2], %s2098_s5  ;;  %s3109_s18 = scalar_lea.hbm %s3153_s2, %s2174_s6 }
  0x18   : > { %s2172_s24 = sshll.u32 %s2391_s23, 4  ;;  %v225_v16 = vsub.s32 4, %v2397_v11  ;;  %v2401_v18 = vsub.s32 0, %v2397_v11  ;;  %s2173_s28 = sshll.u32 %s2391_s23, 8 }
  0x19   : > { %s185_s27 = scalar_lea.vmem %s3151_s0, %s2172_s24  ;;  %s2467_s3 = scalar_lea.vmem %s3152_s1, %s2173_s28 }
  0x1a   : > { %v193_v1 = vld [vmem:[%s185_s27] sm:$0x77]  ;;  %v194_v2 = vld [vmem:[%s185_s27 + $0x8] sm:$0x77]  ;;  %s2005_s8 = sshll.u32 %s176_s7, 4  ;;  %s1989_s20 = scalar_lea.sflag [#allocation3], %s174_s4  ;;  %s2006_s8 = int_to_ptr.vmem [resolvable:$true] %s2005_s8 }
  0x1b   : > { %v195_v3 = vadd.f32 1.0, %v193_v1  ;;  %v196_v4 = vadd.f32 1.0, %v194_v2  ;;  %s2236_s23 = scalar_lea.vmem %s2006_s8, 256  ;;  %s2316_s12 = smov [#allocation2]  }
  0x1c   : > { %p2237_p12 = scmp.ne.s32.totalorder %s2006_s8, %s2236_s23  ;;  %s2240_s24 = sshll.u32 %s2316_s12, 4  ;;  %s2241_s24 = int_to_ptr.vmem [resolvable:$false] %s2240_s24 }
  0x1d   : > { %v197_v5 = vmul.f32 0.5, %v195_v3  ;;  %v198_v7 = vmul.f32 0.5, %v196_v4  ;;  %s2242_s25 = scalar_lea.vmem %s2241_s24, 512  ;;  %p2243_p1 = scmp.lt.s32.totalorder %s2006_s8, %s2241_s24 }
  0x1e   : > { %p2238_p13 = pnand %p2237_p12, %p2372_p4  ;;  %p2244_p2 = scmp.lt.s32.totalorder %s2242_s25, %s2236_s23 }
  0x1f   : > { %v199_v8 = vmul.f32 7.0, %v197_v5  ;;  %v200_v9 = vmul.f32 7.0, %v198_v7 }
  0x20   : > { %p2239_p0 = pneg %p2238_p13  ;;  %p2245_p3 = por %p2244_p2, %p2243_p1 }
  0x21   : > { %v201_v10 = vmax.f32 %v199_v8, 0.0  ;;  %v202_v12 = vmax.f32 %v200_v9, 0.0 }
  0x22   : > { %p2246_p5 = pnand %p2245_p3, %p2239_p0 }
  0x23   : > { %v203_v13 = vmin.f32 %v201_v10, 7.0  ;;  %v204_v14 = vmin.f32 %v202_v12, 7.0  ;;  %v693_v10 = vld [vmem:[%s2467_s3] sm:$0xff] }
  0x25   : > { %v205_v15 = vfloor.f32 %v203_v13  ;;  %v206_v17 = vfloor.f32 %v204_v14 }
  0x27   : > { %v2403_v19 = vsub.f32 %v203_v13, %v205_v15  ;;  %v2175_v20 = vtrunc.f32 %v205_v15  ;;  %v2405_v21 = vsub.f32 %v204_v14, %v206_v17  ;;  %v2177_v22 = vtrunc.f32 %v206_v17  ;;  %v694_v14 = vld [vmem:[%s2467_s3 + $0x8] sm:$0xff]  ;;  %v695_v15 = vld [vmem:[%s2467_s3 + $0x10] sm:$0xff]  ;;  %v697_v17 = vld [vmem:[%s2467_s3 + $0x20] sm:$0xff] }
  0x29   : > { %v2407_v23 = vcvt.f32.s32 %v2175_v20  ;;  %v2410_v24 = vsub.f32 1.0, %v2403_v19  ;;  %v344_v25 = vrot.slane %v2403_v19, %v225_v16  ;;  %v2413_v26 = vcvt.f32.s32 %v2177_v22  ;;  %v698_v20 = vld [vmem:[%s2467_s3 + $0x28] sm:$0xff]  ;;  %v699_v22 = vld [vmem:[%s2467_s3 + $0x30] sm:$0xff] }
  0x2a   : > { %v2416_v27 = vsub.f32 1.0, %v2405_v21  ;;  %v352_v28 = vrot.slane %v2405_v21, %v225_v16  ;;  %v340_v29 = vrot.slane %v2403_v19, %v2401_v18  ;;  %v348_v30 = vrot.slane %v2405_v21, %v2401_v18 }
  0x2b   : > { %v211_v31 = vadd.s32 1, %v2407_v23  ;;  %v226_v32 = vrot.slane %v2407_v23, %v225_v16  ;;  %v266_v33 = vrot.slane %v2410_v24, %v225_v16  ;;  %v364_v34 = vrot.slane %v344_v25, %v2401_v18  ;;  %v700_v25 = vld [vmem:[%s2467_s3 + $0x38] sm:$0xff] }
  0x2c   : > { %v212_v35 = vadd.s32 1, %v2413_v26  ;;  %v234_v36 = vrot.slane %v2413_v26, %v225_v16  ;;  %v274_v37 = vrot.slane %v2416_v27, %v225_v16  ;;  %v372_v38 = vrot.slane %v352_v28, %v2401_v18  ;;  %v701_v28 = vld [vmem:[%s2467_s3 + $0x40] sm:$0xff] }
  0x2d   : > { %vm213_vm0 = vcmp.lt.s32.totalorder %v211_v31, 7  ;;  %v242_v39 = vrot.slane %v226_v32, %v2401_v18  ;;  %v286_v40 = vrot.slane %v266_v33, %v2401_v18  ;;  %v222_v41 = vrot.slane %v2407_v23, %v2401_v18  ;;  %v705_v32 = vld [vmem:[%s2467_s3 + $0x60] sm:$0xff]  ;;  %v706_v33 = vld [vmem:[%s2467_s3 + $0x68] sm:$0xff] }
  0x2e   : > { %v2435_v42 = vsel %vm213_vm0, %v211_v31, 7  ;;  %vm215_vm1 = vcmp.lt.s32.totalorder %v212_v35, 7  ;;  %v250_v43 = vrot.slane %v234_v36, %v2401_v18  ;;  %v294_v44 = vrot.slane %v274_v37, %v2401_v18  ;;  %v704_v31 = vld [vmem:[%s2467_s3 + $0x58] sm:$0xff]  ;;  %v709_v36 = vld [vmem:[%s2467_s3 + $0x80] sm:$0xff]  ;;  %v710_v37 = vld [vmem:[%s2467_s3 + $0x88] sm:$0xff] }
  0x2f   : > { %vm252_vm2 = vcmp.eq.s32.totalorder %v2397_v11, %v242_v39  ;;  %v306_v45 = vrot.slane %v2435_v42, %v225_v16  ;;  %v2441_v46 = vsel %vm215_vm1, %v212_v35, 7  ;;  %v238_v47 = vrot.slane %v222_v41, %v2401_v18  ;;  %v708_v35 = vld [vmem:[%s2467_s3 + $0x78] sm:$0xff]  ;;  %v714_v41 = vld [vmem:[%s2467_s3 + $0xa8] sm:$0xff] }
  0x30   : > { %v296_v48 = vsel %vm252_vm2, %v286_v40, 0.0  ;;  %vm254_vm3 = vcmp.eq.s32.totalorder %v2397_v11, %v250_v43  ;;  %v314_v49 = vrot.slane %v2441_v46, %v225_v16  ;;  %v262_v50 = vrot.slane %v2410_v24, %v2401_v18  ;;  %v696_v16 = vld [vmem:[%s2467_s3 + $0x18] sm:$0xff]  ;;  %v713_v40 = vld [vmem:[%s2467_s3 + $0xa0] sm:$0xff]  ;;  %v715_v43 = vld [vmem:[%s2467_s3 + $0xb0] sm:$0xff] }
  0x31   : > { %v322_v51 = vrot.slane %v306_v45, %v2401_v18  ;;  %v298_v52 = vsel %vm254_vm3, %v294_v44, 0.0  ;;  %vm251_vm4 = vcmp.eq.s32.totalorder %v2397_v11, %v238_v47  ;;  %v302_v53 = vrot.slane %v2435_v42, %v2401_v18  ;;  %v712_v39 = vld [vmem:[%s2467_s3 + $0x98] sm:$0xff]  ;;  %v717_v45 = vld [vmem:[%s2467_s3 + $0xc0] sm:$0xff]  ;;  %v718_v47 = vld [vmem:[%s2467_s3 + $0xc8] sm:$0xff] }
  0x32   : > { %v330_v54 = vrot.slane %v314_v49, %v2401_v18  ;;  %v282_v55 = vrot.slane %v262_v50, %v2401_v18  ;;  %v360_v56 = vrot.slane %v340_v29, %v2401_v18  ;;  %v230_v57 = vrot.slane %v2413_v26, %v2401_v18  ;;  %v702_v29 = vld [vmem:[%s2467_s3 + $0x48] sm:$0xff]  ;;  %v716_v44 = vld [vmem:[%s2467_s3 + $0xb8] sm:$0xff]  ;;  %v721_v50 = vld [vmem:[%s2467_s3 + $0xe0] sm:$0xff] }
  0x33   : > { %vm332_vm5 = vcmp.eq.s32.totalorder %v2397_v11, %v322_v51  ;;  %v318_v58 = vrot.slane %v302_v53, %v2401_v18  ;;  %v270_v59 = vrot.slane %v2416_v27, %v2401_v18  ;;  %v310_v60 = vrot.slane %v2441_v46, %v2401_v18  ;;  %v720_v49 = vld [vmem:[%s2467_s3 + $0xd8] sm:$0xff]  ;;  %v722_v51 = vld [vmem:[%s2467_s3 + $0xe8] sm:$0xff] }
  0x34   : > { %v374_v61 = vsel %vm332_vm5, %v364_v34, 0.0  ;;  %vm334_vm6 = vcmp.eq.s32.totalorder %v2397_v11, %v330_v54  ;;  %v295_v62 = vsel %vm251_vm4, %v282_v55, 0.0  ;;  %v246_v63 = vrot.slane %v230_v57, %v2401_v18  ;;  %v707_v34 = vld [vmem:[%s2467_s3 + $0x70] sm:$0xff]  ;;  %v724_v53 = vld [vmem:[%s2467_s3 + $0xf8] sm:$0xff] }
  0x35   : > { %v378_v1 = vadd.f32 %v374_v61, %v296_v48  ;;  %v376_v2 = vsel %vm334_vm6, %v372_v38, 0.0  ;;  %vm331_vm7 = vcmp.eq.s32.totalorder %v2397_v11, %v318_v58  ;;  %v290_v3 = vrot.slane %v270_v59, %v2401_v18  ;;  %v711_v38 = vld [vmem:[%s2467_s3 + $0x90] sm:$0xff] }
  0x36   : > { %v380_v4 = vadd.f32 %v376_v2, %v298_v52  ;;  %v373_v5 = vsel %vm331_vm7, %v360_v56, 0.0  ;;  %vm253_vm8 = vcmp.eq.s32.totalorder %v2397_v11, %v246_v63  ;;  %v326_v6 = vrot.slane %v310_v60, %v2401_v18  ;;  %v719_v48 = vld [vmem:[%s2467_s3 + $0xd0] sm:$0xff] }
  0x37   : > { %852 = vmatprep.subr.mxu0 %v378_v1  ;;  %v377_v7 = vadd.f32 %v373_v5, %v295_v62  ;;  %v297_v8 = vsel %vm253_vm8, %v290_v3, 0.0  ;;  %v368_v9 = vrot.slane %v348_v30, %v2401_v18  ;;  %v703_v30 = vld [vmem:[%s2467_s3 + $0x50] sm:$0xff]  ;;  %v2636_v54 = vsub.s32 2, %v2397_v11 }
  0x38   : > { %1109 = vmatprep.subr.mxu1 %v380_v4  ;;  %vm333_vm10 = vcmp.eq.s32.totalorder %v2397_v11, %v326_v6  ;;  %v723_v52 = vld [vmem:[%s2467_s3 + $0xf0] sm:$0xff]  ;;  %v543_v55 = vsub.s32 6, %v2397_v11 }
  0x39   : > { %853 = vmatpush1.msra.mxu0 %v377_v7  ;;  %v375_v12 = vsel %vm333_vm10, %v368_v9, 0.0  ;;  %v540_v56 = vrot.slane %v2407_v23, %v2636_v54  ;;  %v548_v58 = vrot.slane %v2413_v26, %v2636_v54  ;;  %v624_v62 = vrot.slane %v2441_v46, %v2636_v54 }
  0x3a   : > { %v379_v13 = vadd.f32 %v375_v12, %v297_v8  ;;  %2103 = vmatmul.mubr.msk.f32.vlgmr.msra.gmra.mxu0 %vm725_vm9, %v693_v10  ;;  %v544_v57 = vrot.slane %v2407_v23, %v543_v55  ;;  %v552_v59 = vrot.slane %v2413_v26, %v543_v55  ;;  %v620_v61 = vrot.slane %v2435_v42, %v543_v55 }
  0x3b   : > { %892 = vmatprep.mubr.f32.mxu0 %v2314_v0  ;;  %v556_v60 = vrot.slane %v540_v56, %v2636_v54  ;;  %v628_v63 = vrot.slane %v2441_v46, %v543_v55  ;;  %v564_v2 = vrot.slane %v548_v58, %v2636_v54  ;;  %v576_v3 = vrot.slane %v2410_v24, %v2636_v54 }
  0x3c   : > { %1110 = vmatpush1.msra.mxu1 %v379_v13  ;;  %v560_v1 = vrot.slane %v544_v57, %v2636_v54  ;;  %v580_v4 = vrot.slane %v2410_v24, %v543_v55  ;;  %v584_v5 = vrot.slane %v2416_v27, %v2636_v54  ;;  %v588_v6 = vrot.slane %v2416_v27, %v543_v55 }
  0x3d   : > { %2135 = vmatmul.mubr.msk.f32.vlgmr.msra.gmra.mxu1 %vm725_vm9, %v693_v10  ;;  %v652_v8 = vrot.slane %v2403_v19, %v2636_v54  ;;  %v568_v9 = vrot.slane %v552_v59, %v2636_v54  ;;  %v656_v10 = vrot.slane %v2403_v19, %v543_v55  ;;  %v660_v12 = vrot.slane %v2405_v21, %v2636_v54 }
  0x3e   : > { %1149 = vmatprep.mubr.f32.mxu1 %v2314_v0  ;;  %2104 = vmatmul.mubr.msk.f32.gmra.mxu0 %vm725_vm9, %v694_v14  ;;  %v664_v13 = vrot.slane %v2405_v21, %v543_v55  ;;  %vm569_vm11 = vcmp.eq.s32.totalorder %v2397_v11, %v556_v60  ;;  %vm570_vm12 = vcmp.eq.s32.totalorder %v2397_v11, %v560_v1  ;;  %v387_v56 = vsub.s32 5, %v2397_v11 }
  0x3f   : > { %898 = vmatprep.mubr.f32.mxu0 %v2314_v0  ;;  %vm571_vm13 = vcmp.eq.s32.totalorder %v2397_v11, %v564_v2  ;;  %vm572_vm15 = vcmp.eq.s32.totalorder %v2397_v11, %v568_v9 }
  0x40   : > { %v388_v1 = vrot.slane %v2407_v23, %v387_v56  ;;  %v464_v2 = vrot.slane %v2435_v42, %v387_v56 }
  0x41   : > { %2136 = vmatmul.mubr.msk.f32.gmra.mxu1 %vm725_vm9, %v694_v14  ;;  %v636_v14 = vrot.slane %v620_v61, %v2636_v54 }
  0x42   : > { %1155 = vmatprep.mubr.f32.mxu1 %v2314_v0  ;;  %2105 = vmatmul.mubr.msk.f32.gmra.mxu0 %vm725_vm9, %v695_v15 }
  0x43   : > { %904 = vmatprep.mubr.f32.mxu0 %v2314_v0  ;;  %vm646_vm0 = vcmp.eq.s32.totalorder %v2397_v11, %v636_v14 }
  0x45   : > { %2137 = vmatmul.mubr.msk.f32.gmra.mxu1 %vm725_vm9, %v695_v15  ;;  %v640_v15 = vrot.slane %v624_v62, %v2636_v54 }
  0x46   : > { %1161 = vmatprep.mubr.f32.mxu1 %v2314_v0  ;;  %2106 = vmatmul.mubr.msk.f32.gmra.mxu0 %vm725_vm9, %v696_v16 }
  0x47   : > { %910 = vmatprep.mubr.f32.mxu0 %v2314_v0  ;;  %vm647_vm1 = vcmp.eq.s32.totalorder %v2397_v11, %v640_v15  ;;  %v432_v15 = vrot.slane %v2416_v27, %v387_v56 }
  0x49   : > { %2138 = vmatmul.mubr.msk.f32.gmra.mxu1 %vm725_vm9, %v696_v16  ;;  %v644_v16 = vrot.slane %v628_v63, %v2636_v54 }
  0x4a   : > { %1167 = vmatprep.mubr.f32.mxu1 %v2314_v0  ;;  %2107 = vmatmul.mubr.msk.f32.gmra.mxu0 %vm725_vm9, %v697_v17 }
  0x4b   : > { %916 = vmatprep.mubr.f32.mxu0 %v2314_v0  ;;  %vm648_vm2 = vcmp.eq.s32.totalorder %v2397_v11, %v644_v16 }
  0x4d   : > { %2139 = vmatmul.mubr.msk.f32.gmra.mxu1 %vm725_vm9, %v697_v17  ;;  %v596_v17 = vrot.slane %v576_v3, %v2636_v54  ;;  %v396_v3 = vrot.slane %v2413_v26, %v387_v56 }
  0x4e   : > { %1173 = vmatprep.mubr.f32.mxu1 %v2314_v0  ;;  %2108 = vmatmul.mubr.msk.f32.gmra.mxu0 %vm725_vm9, %v698_v20 }
  0x4f   : > { %922 = vmatprep.mubr.f32.mxu0 %v2314_v0 }
  0x51   : > { %2140 = vmatmul.mubr.msk.f32.gmra.mxu1 %vm725_vm9, %v698_v20  ;;  %v600_v20 = vrot.slane %v580_v4, %v2636_v54 }
  0x52   : > { %1179 = vmatprep.mubr.f32.mxu1 %v2314_v0  ;;  %2109 = vmatmul.mubr.msk.f32.gmra.mxu0 %vm725_vm9, %v699_v22 }
  0x53   : > { %928 = vmatprep.mubr.f32.mxu0 %v2314_v0 }
  0x55   : > { %2141 = vmatmul.mubr.msk.f32.gmra.mxu1 %vm725_vm9, %v699_v22  ;;  %v604_v22 = vrot.slane %v584_v5, %v2636_v54 }
  0x56   : > { %1185 = vmatprep.mubr.f32.mxu1 %v2314_v0  ;;  %2110 = vmatmul.mubr.msk.f32.gmra.mxu0 %vm725_vm9, %v700_v25 }
  0x57   : > { %934 = vmatprep.mubr.f32.mxu0 %v2314_v0 }
  0x59   : > { %2142 = vmatmul.mubr.msk.f32.gmra.mxu1 %vm725_vm9, %v700_v25  ;;  %v608_v25 = vrot.slane %v588_v6, %v2636_v54 }
  0x5a   : > { %1191 = vmatprep.mubr.f32.mxu1 %v2314_v0  ;;  %2111 = vmatmul.mubr.msk.f32.gmra.mxu0 %vm725_vm9, %v701_v28 }
  0x5b   : > { %940 = vmatprep.mubr.f32.mxu0 %v2314_v0 }
  0x5d   : > { %2143 = vmatmul.mubr.msk.f32.gmra.mxu1 %vm725_vm9, %v701_v28  ;;  %v672_v28 = vrot.slane %v652_v8, %v2636_v54 }
  0x5e   : > { %1197 = vmatprep.mubr.f32.mxu1 %v2314_v0  ;;  %2112 = vmatmul.mubr.msk.f32.gmra.mxu0 %vm725_vm9, %v702_v29 }
  0x5f   : > { %946 = vmatprep.mubr.f32.mxu0 %v2314_v0 }
  0x61   : > { %2144 = vmatmul.mubr.msk.f32.gmra.mxu1 %vm725_vm9, %v702_v29  ;;  %v676_v29 = vrot.slane %v656_v10, %v2636_v54  ;;  %v424_v10 = vrot.slane %v2410_v24, %v387_v56 }
  0x62   : > { %1203 = vmatprep.mubr.f32.mxu1 %v2314_v0  ;;  %2113 = vmatmul.mubr.msk.f32.gmra.mxu0 %vm725_vm9, %v703_v30 }
  0x63   : > { %952 = vmatprep.mubr.f32.mxu0 %v2314_v0 }
  0x65   : > { %2145 = vmatmul.mubr.msk.f32.gmra.mxu1 %vm725_vm9, %v703_v30  ;;  %v680_v30 = vrot.slane %v660_v12, %v2636_v54 }
  0x66   : > { %1209 = vmatprep.mubr.f32.mxu1 %v2314_v0  ;;  %2114 = vmatmul.mubr.msk.f32.gmra.mxu0 %vm725_vm9, %v704_v31 }
  0x67   : > { %958 = vmatprep.mubr.f32.mxu0 %v2314_v0 }
  0x69   : > { %2146 = vmatmul.mubr.msk.f32.gmra.mxu1 %vm725_vm9, %v704_v31  ;;  %v684_v31 = vrot.slane %v664_v13, %v2636_v54  ;;  %v500_v13 = vrot.slane %v2403_v19, %v387_v56 }
  0x6a   : > { %1215 = vmatprep.mubr.f32.mxu1 %v2314_v0  ;;  %2115 = vmatmul.mubr.msk.f32.gmra.mxu0 %vm725_vm9, %v705_v32 }
  0x6b   : > { %964 = vmatprep.mubr.f32.mxu0 %v2314_v0 }
  0x6d   : > { %2147 = vmatmul.mubr.msk.f32.gmra.mxu1 %vm725_vm9, %v705_v32  ;;  %v609_v32 = vsel %vm569_vm11, %v596_v17, 0.0  ;;  %v508_v17 = vrot.slane %v2405_v21, %v387_v56  ;;  %vm1961_vm11 = vcmask 1041409  }
  0x6e   : > { %1221 = vmatprep.mubr.f32.mxu1 %v2314_v0  ;;  %2116 = vmatmul.mubr.msk.f32.gmra.mxu0 %vm725_vm9, %v706_v33 }
  0x6f   : > { %970 = vmatprep.mubr.f32.mxu0 %v2314_v0 }
  0x71   : > { %2148 = vmatmul.mubr.msk.f32.gmra.mxu1 %vm725_vm9, %v706_v33  ;;  %v610_v33 = vsel %vm570_vm12, %v600_v20, 0.0  ;;  %vm1963_vm12 = vcmask 1045509  }
  0x72   : > { %1227 = vmatprep.mubr.f32.mxu1 %v2314_v0  ;;  %2117 = vmatmul.mubr.msk.f32.gmra.mxu0 %vm725_vm9, %v707_v34 }
  0x73   : > { %976 = vmatprep.mubr.f32.mxu0 %v2314_v0 }
  0x75   : > { %2149 = vmatmul.mubr.msk.f32.gmra.mxu1 %vm725_vm9, %v707_v34  ;;  %v611_v34 = vsel %vm571_vm13, %v604_v22, 0.0  ;;  %vm1966_vm13 = vcmask 1042434  }
  0x76   : > { %1233 = vmatprep.mubr.f32.mxu1 %v2314_v0  ;;  %2118 = vmatmul.mubr.msk.f32.gmra.mxu0 %vm725_vm9, %v708_v35 }
  0x77   : > { %982 = vmatprep.mubr.f32.mxu0 %v2314_v0 }
  0x79   : > { %2150 = vmatmul.mubr.msk.f32.gmra.mxu1 %vm725_vm9, %v708_v35 }
  0x7a   : > { %1239 = vmatprep.mubr.f32.mxu1 %v2314_v0  ;;  %2119 = vmatmul.mubr.msk.f32.gmra.mxu0 %vm725_vm9, %v709_v36 }
  0x7b   : > { %988 = vmatprep.mubr.f32.mxu0 %v2314_v0 }
  0x7d   : > { %2151 = vmatmul.mubr.msk.f32.gmra.mxu1 %vm725_vm9, %v709_v36  ;;  %v2315_v36 = vmov 1966171168  }
  0x7e   : > { %1245 = vmatprep.mubr.f32.mxu1 %v2314_v0  ;;  %2120 = vmatmul.mubr.msk.f32.gmra.mxu0 %vm725_vm9, %v710_v37 }
  0x7f   : > { %994 = vmatprep.mubr.f32.mxu0 %v2314_v0 }
  0x81   : > { %2152 = vmatmul.mubr.msk.f32.gmra.mxu1 %vm725_vm9, %v710_v37  ;;  %v1345_v37 = vunpack.c.l.s4 %v2315_v36 }
  0x82   : > { %1251 = vmatprep.mubr.f32.mxu1 %v2314_v0  ;;  %2121 = vmatmul.mubr.msk.f32.gmra.mxu0 %vm725_vm9, %v711_v38 }
  0x83   : > { %1000 = vmatprep.mubr.f32.mxu0 %v2314_v0 }
  0x85   : > { %2153 = vmatmul.mubr.msk.f32.gmra.mxu1 %vm725_vm9, %v711_v38  ;;  %v612_v38 = vsel %vm572_vm15, %v608_v25, 0.0  ;;  %vm1971_vm15 = vcmask 1043459  }
  0x86   : > { %1257 = vmatprep.mubr.f32.mxu1 %v2314_v0  ;;  %2122 = vmatmul.mubr.msk.f32.gmra.mxu0 %vm725_vm9, %v712_v39 }
  0x87   : > { %1006 = vmatprep.mubr.f32.mxu0 %v2314_v0 }
  0x89   : > { %2154 = vmatmul.mubr.msk.f32.gmra.mxu1 %vm725_vm9, %v712_v39  ;;  %v686_v39 = vsel %vm646_vm0, %v676_v29, 0.0  ;;  %vm1973_vm0 = vcmask 1047559  }
  0x8a   : > { %1263 = vmatprep.mubr.f32.mxu1 %v2314_v0  ;;  %2123 = vmatmul.mubr.msk.f32.gmra.mxu0 %vm725_vm9, %v713_v40 }
  0x8b   : > { %1012 = vmatprep.mubr.f32.mxu0 %v2314_v0 }
  0x8d   : > { %2155 = vmatmul.mubr.msk.f32.gmra.mxu1 %vm725_vm9, %v713_v40  ;;  %v687_v40 = vsel %vm647_vm1, %v680_v30, 0.0 }
  0x8e   : > { %1269 = vmatprep.mubr.f32.mxu1 %v2314_v0  ;;  %2124 = vmatmul.mubr.msk.f32.gmra.mxu0 %vm725_vm9, %v714_v41 }
  0x8f   : > { %1018 = vmatprep.mubr.f32.mxu0 %v2314_v0 }
  0x91   : > { %2156 = vmatmul.mubr.msk.f32.gmra.mxu1 %vm725_vm9, %v714_v41  ;;  %v688_v41 = vsel %vm648_vm2, %v684_v31, 0.0 }
  0x92   : > { %1275 = vmatprep.mubr.f32.mxu1 %v2314_v0  ;;  %2125 = vmatmul.mubr.msk.f32.gmra.mxu0 %vm725_vm9, %v715_v43 }
  0x93   : > { %1024 = vmatprep.mubr.f32.mxu0 %v2314_v0 }
  0x95   : > { %2157 = vmatmul.mubr.msk.f32.gmra.mxu1 %vm725_vm9, %v715_v43  ;;  %v2694_v43 = vsub.s32 1, %v2397_v11 }
  0x96   : > { %1281 = vmatprep.mubr.f32.mxu1 %v2314_v0  ;;  %2126 = vmatmul.mubr.msk.f32.gmra.mxu0 %vm725_vm9, %v716_v44 }
  0x97   : > { %1030 = vmatprep.mubr.f32.mxu0 %v2314_v0  ;;  %v420_v58 = vrot.slane %v2410_v24, %v2694_v43  ;;  %v496_v59 = vrot.slane %v2403_v19, %v2694_v43  ;;  %v392_v62 = vrot.slane %v2413_v26, %v2694_v43  ;;  %v468_v63 = vrot.slane %v2441_v46, %v2694_v43 }
  0x98   : > { %v504_v8 = vrot.slane %v2405_v21, %v2694_v43  ;;  %v404_v9 = vrot.slane %v388_v1, %v2694_v43  ;;  %v480_v12 = vrot.slane %v464_v2, %v2694_v43  ;;  %v412_v14 = vrot.slane %v396_v3, %v2694_v43 }
  0x99   : > { %2158 = vmatmul.mubr.msk.f32.gmra.mxu1 %vm725_vm9, %v716_v44  ;;  %v440_v4 = vrot.slane %v420_v58, %v2694_v43  ;;  %v516_v5 = vrot.slane %v496_v59, %v2694_v43  ;;  %v484_v26 = vrot.slane %v468_v63, %v2694_v43  ;;  %v444_v19 = vrot.slane %v424_v10, %v2694_v43 }
  0x9a   : > { %1287 = vmatprep.mubr.f32.mxu1 %v2314_v0  ;;  %2127 = vmatmul.mubr.msk.f32.gmra.mxu0 %vm725_vm9, %v717_v45  ;;  %v524_v24 = vrot.slane %v504_v8, %v2694_v43  ;;  %vm414_vm7 = vcmp.eq.s32.totalorder %v2397_v11, %v404_v9  ;;  %vm490_vm8 = vcmp.eq.s32.totalorder %v2397_v11, %v480_v12 }
  0x9b   : > { %1036 = vmatprep.mubr.f32.mxu0 %v2314_v0  ;;  %vm491_vm6 = vcmp.eq.s32.totalorder %v2397_v11, %v484_v26  ;;  %v520_v21 = vrot.slane %v500_v13, %v2694_v43  ;;  %v528_v29 = vrot.slane %v508_v17, %v2694_v43 }
  0x9c   : > { %v531_v36 = vsel %vm491_vm6, %v524_v24, 0.0 }
  0x9d   : > { %2159 = vmatmul.mubr.msk.f32.gmra.mxu1 %vm725_vm9, %v717_v45  ;;  %v2698_v45 = vadd.f32 %v686_v39, %v610_v33  ;;  %v530_v39 = vsel %vm490_vm8, %v520_v21, 0.0 }
  0x9e   : > { %1293 = vmatprep.mubr.f32.mxu1 %v2314_v0  ;;  %2128 = vmatmul.mubr.msk.f32.gmra.mxu0 %vm725_vm9, %v718_v47 }
  0x9f   : > { %1042 = vmatprep.mubr.f32.mxu0 %v2314_v0 }
  0xa1   : > { %2160 = vmatmul.mubr.msk.f32.gmra.mxu1 %vm725_vm9, %v718_v47  ;;  %v2700_v47 = vadd.f32 %v687_v40, %v611_v34 }
  0xa2   : > { %1299 = vmatprep.mubr.f32.mxu1 %v2314_v0  ;;  %2129 = vmatmul.mubr.msk.f32.gmra.mxu0 %vm725_vm9, %v719_v48 }
  0xa3   : > { %1048 = vmatprep.mubr.f32.mxu0 %v2314_v0 }
  0xa5   : > { %2161 = vmatmul.mubr.msk.f32.gmra.mxu1 %vm725_vm9, %v719_v48  ;;  %v2702_v48 = vadd.f32 %v688_v41, %v612_v38  ;;  %v454_v38 = vsel %vm414_vm7, %v444_v19, 0.0  ;;  %v2776_v41 = vsub.s32 3, %v2397_v11 }
  0xa6   : > { %1305 = vmatprep.mubr.f32.mxu1 %v2314_v0  ;;  %2130 = vmatmul.mubr.msk.f32.gmra.mxu0 %vm725_vm9, %v720_v49 }
  0xa7   : > { %1054 = vmatprep.mubr.f32.mxu0 %v2314_v0 }
  0xa9   : > { %2162 = vmatmul.mubr.msk.f32.gmra.mxu1 %vm725_vm9, %v720_v49  ;;  %v1346_v49 = vunpack.c.0.s8 %v1345_v37 }
  0xaa   : > { %1311 = vmatprep.mubr.f32.mxu1 %v2314_v0  ;;  %2131 = vmatmul.mubr.msk.f32.gmra.mxu0 %vm725_vm9, %v721_v50 }
  0xab   : > { %1060 = vmatprep.mubr.f32.mxu0 %v2314_v0  ;;  %v2713_v55 = vsub.s32 %v1346_v49, %v2397_v11 }
  0xad   : > { %2163 = vmatmul.mubr.msk.f32.gmra.mxu1 %vm725_vm9, %v721_v50  ;;  %v384_v50 = vrot.slane %v2407_v23, %v2694_v43  ;;  %v472_v23 = vrot.slane %v2441_v46, %v387_v56 }
  0xae   : > { %1317 = vmatprep.mubr.f32.mxu1 %v2314_v0  ;;  %2132 = vmatmul.mubr.msk.f32.gmra.mxu0 %vm725_vm9, %v722_v51 }
  0xaf   : > { %1066 = vmatprep.mubr.f32.mxu0 %v2314_v0  ;;  %v400_v57 = vrot.slane %v384_v50, %v2694_v43 }
  0xb1   : > { %2164 = vmatmul.mubr.msk.f32.gmra.mxu1 %vm725_vm9, %v722_v51  ;;  %v460_v51 = vrot.slane %v2435_v42, %v2694_v43  ;;  %vm413_vm3 = vcmp.eq.s32.totalorder %v2397_v11, %v400_v57 }
  0xb2   : > { %1323 = vmatprep.mubr.f32.mxu1 %v2314_v0  ;;  %2133 = vmatmul.mubr.msk.f32.gmra.mxu0 %vm725_vm9, %v723_v52  ;;  %v453_v16 = vsel %vm413_vm3, %v440_v4, 0.0 }
  0xb3   : > { %1072 = vmatprep.mubr.f32.mxu0 %v2314_v0 }
  0xb5   : > { %2165 = vmatmul.mubr.msk.f32.gmra.mxu1 %vm725_vm9, %v723_v52 }
  0xb6   : > { %1329 = vmatprep.mubr.f32.mxu1 %v2314_v0  ;;  %2134 = vmatmul.mubr.msk.f32.gmra.mxu0 %vm725_vm9, %v724_v53  ;;  %v616_v0 = vrot.slane %v2435_v42, %v2636_v54  ;;  %v408_v42 = vrot.slane %v392_v62, %v2694_v43 }
  0xb8   : > { %v632_v7 = vrot.slane %v616_v0, %v2636_v54  ;;  %v476_v0 = vrot.slane %v460_v51, %v2694_v43  ;;  %vm415_vm5 = vcmp.eq.s32.totalorder %v2397_v11, %v408_v42 }
  0xb9   : > { %2166 = vmatmul.mubr.msk.f32.gmra.mxu1 %vm725_vm9, %v724_v53  ;;  %v1342_v53 = vcombine.low %v2700_v47, %v2702_v48  ;;  %vm416_vm9 = vcmp.eq.s32.totalorder %v2397_v11, %v412_v14 }
  0xba   : > { %vm645_vm14 = vcmp.eq.s32.totalorder %v2397_v11, %v632_v7  ;;  %vm489_vm4 = vcmp.eq.s32.totalorder %v2397_v11, %v476_v0  ;;  %v428_v7 = vrot.slane %v2416_v27, %v2694_v43  ;;  %v452_v27 = vrot.slane %v432_v15, %v2694_v43 }
  0xbb   : > { %v685_v35 = vsel %vm645_vm14, %v672_v28, 0.0  ;;  %v1364_v61 = vrot.slane %v1342_v53, %v2713_v55  ;;  %v529_v46 = vsel %vm489_vm4, %v516_v5, 0.0  ;;  %v488_v28 = vrot.slane %v472_v23, %v2694_v43 }
  0xbc   : > { %v2696_v44 = vadd.f32 %v685_v35, %v609_v32  ;;  %v448_v25 = vrot.slane %v428_v7, %v2694_v43  ;;  %v1343_v32 = vcombine.high %v2700_v47, %v2702_v48  ;;  %v2769_v33 = vadd.f32 %v529_v46, %v453_v16 }
  0xbd   : > { %vm492_vm10 = vcmp.eq.s32.totalorder %v2397_v11, %v488_v28  ;;  %v456_v40 = vsel %vm416_vm9, %v452_v27, 0.0  ;;  %vm1968_vm14 = vcmask 1046534  }
  0xbe   : > { %v1340_v52 = vcombine.low %v2696_v44, %v2698_v45  ;;  %v1341_v31 = vcombine.high %v2696_v44, %v2698_v45  ;;  %v455_v35 = vsel %vm415_vm5, %v448_v25, 0.0  ;;  %v532_v44 = vsel %vm492_vm10, %v528_v29, 0.0 }
  0xbf   : > { %v1371_v48 = vrot.slane %v1343_v32, %v2713_v55  ;;  %v2781_v49 = vadd.f32 %v531_v36, %v455_v35  ;;  %v2790_v58 = vadd.f32 %v532_v44, %v456_v40 }
  0xc0   : > { %v1350_v60 = vrot.slane %v1340_v52, %v2713_v55  ;;  %v1357_v47 = vrot.slane %v1341_v31, %v2713_v55  ;;  %v2785_v52 = vadd.f32 %v530_v39, %v454_v38 }
  0xc2   : > { %v1372_v6 = vcombine.low %v1350_v60, %v1364_v61  ;;  %v1373_v20 = vcombine.high %v1350_v60, %v1364_v61  ;;  %v1374_v63 = vcombine.low %v1357_v47, %v1371_v48  ;;  %v1375_v13 = vcombine.high %v1357_v47, %v1371_v48 }
  0xc4   : > { %v1382_v22 = vrot.slane %v1372_v6, %v2713_v55  ;;  %v1396_v30 = vrot.slane %v1373_v20, %v2713_v55  ;;  %v2829_v17 = vrot.slane %v1374_v63, %v2713_v55  ;;  %v2850_v36 = vrot.slane %v1375_v13, %v2713_v55 }
  0xc6   : > { %v1411_v34 = vrot.slane %v1382_v22, %v2401_v18  ;;  %v1404_v37 = vcombine.high %v1382_v22, %v1382_v22  ;;  %v1427_v45 = vrot.slane %v1396_v30, %v2401_v18  ;;  %v1419_v50 = vrot.slane %v1382_v22, %v2636_v54 }
  0xc7   : > { %v1415_v51 = vrot.slane %v1382_v22, %v2694_v43  ;;  %v1435_v53 = vrot.slane %v1396_v30, %v2636_v54  ;;  %v1431_v11 = vrot.slane %v1396_v30, %v2694_v43  ;;  %v1423_v0 = vrot.slane %v1382_v22, %v2776_v41 }
  0xc8   : > { %v1443_v56 = vrot.slane %v1404_v37, %v2401_v18  ;;  %v1439_v59 = vrot.slane %v1396_v30, %v2776_v41  ;;  %v1406_v60 = vcombine.high %v1396_v30, %v1396_v30  ;;  %v2795_v61 = vmul.f32 %v1411_v34, %v2769_v33 }
  0xc9   : > { %v2798_v62 = vmul.f32 %v1427_v45, %v2769_v33  ;;  %v2801_v1 = vmul.f32 %v1419_v50, %v2781_v49  ;;  %v1451_v3 = vrot.slane %v1404_v37, %v2636_v54  ;;  %v1447_v4 = vrot.slane %v1404_v37, %v2694_v43 }
  0xca   : > { %v1455_v5 = vrot.slane %v1404_v37, %v2776_v41  ;;  %v2807_v7 = vmul.f32 %v1415_v51, %v2785_v52  ;;  %v2810_v8 = vmul.f32 %v1435_v53, %v2781_v49  ;;  %v2813_v23 = vmul.f32 %v1431_v11, %v2785_v52 }
  0xcb   : > { %v2816_v42 = vmul.f32 %v1443_v56, %v2769_v33  ;;  %v2819_v26 = vmul.f32 %v1423_v0, %v2790_v58  ;;  %v2822_v10 = vmul.f32 %v1439_v59, %v2790_v58  ;;  %v1459_v12 = vrot.slane %v1406_v60, %v2401_v18 }
  0xcc   : > { %v1467_v46 = vrot.slane %v1406_v60, %v2636_v54  ;;  %v2832_v22 = vmul.f32 %v1451_v3, %v2781_v49  ;;  %v2835_v25 = vmul.f32 %v1447_v4, %v2785_v52  ;;  %v2838_v24 = vmul.f32 %v1455_v5, %v2790_v58 }
  0xcd   : > { %v1463_v28 = vrot.slane %v1406_v60, %v2694_v43  ;;  %v1471_v30 = vrot.slane %v1406_v60, %v2776_v41  ;;  %v2847_v35 = vmul.f32 %v1459_v12, %v2769_v33  ;;  %v1475_v44 = vrot.slane %v2829_v17, %v2401_v18 }
  0xce   : > { %v2854_v40 = vmul.f32 %v1467_v46, %v2781_v49  ;;  %v1483_v63 = vrot.slane %v2829_v17, %v2636_v54 }
  0xcf   : > { %v2861_v51 = vmul.f32 %v1463_v28, %v2785_v52  ;;  %v2865_v56 = vmul.f32 %v1471_v30, %v2790_v58 }
  0xfa   : > { %v888_v57 = vpop.f32.mrf.mxu0 }
  0xfb   : > { %v1600_v14 = vmul.f32 %v2795_v61, %v888_v57  ;;  %v1479_v57 = vrot.slane %v2829_v17, %v2694_v43 }
  0xfc   : > { %v890_v2 = vpop.f32.mrf.mxu0 }
  0xfd   : > { %v1145_v6 = vpop.f32.mrf.mxu1  ;;  %v1601_v19 = vmul.f32 %v2807_v7, %v890_v2  ;;  %v1491_v2 = vrot.slane %v2850_v36, %v2401_v18 }
  0xfe   : > { %v894_v9 = vpop.f32.mrf.mxu0  ;;  %v1602_v31 = vmul.f32 %v2801_v1, %v1145_v6  ;;  %v2876_v6 = vmul.f32 %v1475_v44, %v2769_v33 }
  0xff   : > { %v1147_v15 = vpop.f32.mrf.mxu1  ;;  %v1604_v16 = vmul.f32 %v2798_v62, %v894_v9  ;;  %v2880_v9 = vcombine.high %v2829_v17, %v2829_v17 }
 0x100   : > { %v896_v20 = vpop.f32.mrf.mxu0  ;;  %v1603_v45 = vmul.f32 %v2819_v26, %v1147_v15  ;;  %v1487_v15 = vrot.slane %v2829_v17, %v2776_v41  ;;  %v2898_v17 = vmul.f32 %v1491_v2, %v2769_v33 }
 0x101   : > { %v1728_v21 = vadd.f32 %v1604_v16, %v1600_v14  ;;  %v1151_v27 = vpop.f32.mrf.mxu1  ;;  %v1605_v29 = vmul.f32 %v2813_v23, %v896_v20  ;;  %v1499_v16 = vrot.slane %v2850_v36, %v2636_v54 }
 0x102   : > { %v1606_v32 = vmul.f32 %v2810_v8, %v1151_v27  ;;  %v900_v34 = vpop.f32.mrf.mxu0 }
 0x103   : > { %v1741_v37 = vadd.f32 %v1605_v29, %v1601_v19  ;;  %v1153_v38 = vpop.f32.mrf.mxu1  ;;  %v1608_v39 = vmul.f32 %v2816_v42, %v900_v34  ;;  %v2889_v19 = vmul.f32 %v1479_v57, %v2785_v52  ;;  %v2919_v2 = vmul.f32 %v1499_v16, %v2781_v49 }
 0x104   : > { %v1754_v47 = vadd.f32 %v1606_v32, %v1602_v31  ;;  %v1607_v48 = vmul.f32 %v2822_v10, %v1153_v38  ;;  %v902_v50 = vpop.f32.mrf.mxu0  ;;  %v2895_v31 = vmul.f32 %v1483_v63, %v2781_v49  ;;  %v1507_v38 = vrot.slane %v2880_v9, %v2401_v18 }
 0x105   : > { %v1729_v55 = vadd.f32 %v1728_v21, %v1608_v39  ;;  %v1157_v53 = vpop.f32.mrf.mxu1  ;;  %v1609_v11 = vmul.f32 %v2835_v25, %v902_v50  ;;  %v1495_v21 = vrot.slane %v2850_v36, %v2694_v43  ;;  %v1407_v39 = vcombine.high %v2850_v36, %v2850_v36 }
 0x106   : > { %v1767_v0 = vadd.f32 %v1607_v48, %v1603_v45  ;;  %v1610_v59 = vmul.f32 %v2832_v22, %v1157_v53  ;;  %v906_v60 = vpop.f32.mrf.mxu0  ;;  %v2907_v48 = vmul.f32 %v1487_v15, %v2790_v58  ;;  %v1503_v50 = vrot.slane %v2850_v36, %v2776_v41 }
 0x107   : > { %v1742_v3 = vadd.f32 %v1741_v37, %v1609_v11  ;;  %v1159_v4 = vpop.f32.mrf.mxu1  ;;  %v1612_v5 = vmul.f32 %v2847_v35, %v906_v60  ;;  %v2913_v57 = vmul.f32 %v1495_v21, %v2785_v52  ;;  %v1515_v36 = vrot.slane %v2880_v9, %v2636_v54 }
 0x108   : > { %v1755_v12 = vadd.f32 %v1754_v47, %v1610_v59  ;;  %v1611_v13 = vmul.f32 %v2838_v24, %v1159_v4  ;;  %v908_v14 = vpop.f32.mrf.mxu0  ;;  %v1519_v16 = vrot.slane %v2880_v9, %v2776_v41 }
 0x109   : > { %v1730_v46 = vadd.f32 %v1729_v55, %v1612_v5  ;;  %v1163_v20 = vpop.f32.mrf.mxu1  ;;  %v1613_v28 = vmul.f32 %v2861_v51, %v908_v14 }
 0x10a   : > { %v1768_v27 = vadd.f32 %v1767_v0, %v1611_v13  ;;  %v1614_v29 = vmul.f32 %v2854_v40, %v1163_v20  ;;  %v912_v30 = vpop.f32.mrf.mxu0  ;;  %v1511_v0 = vrot.slane %v2880_v9, %v2694_v43  ;;  %v1523_v13 = vrot.slane %v1407_v39, %v2401_v18 }
 0x10b   : > { %v1743_v32 = vadd.f32 %v1742_v3, %v1613_v28  ;;  %v1165_v34 = vpop.f32.mrf.mxu1  ;;  %v1616_v37 = vmul.f32 %v2876_v6, %v912_v30  ;;  %v2930_v20 = vmul.f32 %v1503_v50, %v2790_v58  ;;  %v1527_v30 = vrot.slane %v1407_v39, %v2694_v43 }
 0x10c   : > { %v1756_v44 = vadd.f32 %v1755_v12, %v1614_v29  ;;  %v1615_v45 = vmul.f32 %v2865_v56, %v1165_v34  ;;  %v914_v47 = vpop.f32.mrf.mxu0  ;;  %v2925_v12 = vmul.f32 %v1507_v38, %v2769_v33  ;;  %v2936_v29 = vmul.f32 %v1511_v0, %v2785_v52 }
 0x10d   : > { %v1731_v55 = vadd.f32 %v1730_v46, %v1616_v37  ;;  %v1169_v53 = vpop.f32.mrf.mxu1  ;;  %v1617_v11 = vmul.f32 %v2889_v19, %v914_v47  ;;  %v2941_v37 = vmul.f32 %v1515_v36, %v2781_v49  ;;  %v1531_v38 = vrot.slane %v1407_v39, %v2636_v54 }
 0x10e   : > { %v1769_v59 = vadd.f32 %v1768_v27, %v1615_v45  ;;  %v1618_v60 = vmul.f32 %v2895_v31, %v1169_v53  ;;  %v918_v63 = vpop.f32.mrf.mxu0  ;;  %3170 = vst [vmem:[#allocation5_spill] sm:$0xff] %v2936_v29  ;;  %v2946_v47 = vmul.f32 %v1523_v13, %v2769_v33  ;;  %v2950_v53 = vmul.f32 %v1519_v16, %v2790_v58 }
 0x10f   : > { %v1744_v3 = vadd.f32 %v1743_v32, %v1617_v11  ;;  %v1171_v4 = vpop.f32.mrf.mxu1  ;;  %v1620_v5 = vmul.f32 %v2898_v17, %v918_v63  ;;  %3171 = vst [vmem:[#allocation6_spill] sm:$0xff] %v2941_v37  ;;  %v1535_v11 = vrot.slane %v1407_v39, %v2776_v41 }
 0x110   : > { %v1757_v14 = vadd.f32 %v1756_v44, %v1618_v60  ;;  %v1619_v15 = vmul.f32 %v2907_v48, %v1171_v4  ;;  %v920_v46 = vpop.f32.mrf.mxu0  ;;  %3172 = vst [vmem:[#allocation7_spill] sm:$0xff] %v2946_v47  ;;  %3173 = vst [vmem:[#allocation8_spill] sm:$0xff] %v2950_v53  ;;  %v2955_v60 = vmul.f32 %v1527_v30, %v2785_v52 }
 0x111   : > { %v1732_v28 = vadd.f32 %v1731_v55, %v1620_v5  ;;  %v1175_v21 = vpop.f32.mrf.mxu1  ;;  %v1621_v27 = vmul.f32 %v2913_v57, %v920_v46 }
 0x112   : > { %v1770_v18 = vadd.f32 %v1769_v59, %v1619_v15  ;;  %v1622_v32 = vmul.f32 %v2919_v2, %v1175_v21  ;;  %v924_v34 = vpop.f32.mrf.mxu0  ;;  %3174 = vst [vmem:[#allocation9_spill] sm:$0xff] %v2955_v60  ;;  %v2964_v15 = vmul.f32 %v1535_v11, %v2790_v58 }
 0x113   : > { %v1745_v44 = vadd.f32 %v1744_v3, %v1621_v27  ;;  %v1177_v9 = vpop.f32.mrf.mxu1  ;;  %v1624_v45 = vmul.f32 %v2925_v12, %v924_v34  ;;  %v2959_v3 = vmul.f32 %v1531_v38, %v2781_v49 }
 0x114   : > { %v1758_v50 = vadd.f32 %v1757_v14, %v1622_v32  ;;  %v1623_v55 = vmul.f32 %v2930_v20, %v1177_v9  ;;  %v926_v43 = vpop.f32.mrf.mxu0  ;;  %3176 = vst [vmem:[#allocation11_spill] sm:$0xff] %v2964_v15 }
 0x115   : > { %v1733_v0 = vadd.f32 %v1732_v28, %v1624_v45  ;;  %v1181_v59 = vpop.f32.mrf.mxu1  ;;  %v1625_v54 = vmul.f32 %v2936_v29, %v926_v43  ;;  %3175 = vst [vmem:[#allocation10_spill] sm:$0xff] %v2959_v3 }
 0x116   : > { %v1771_v63 = vadd.f32 %v1770_v18, %v1623_v55  ;;  %v1626_v33 = vmul.f32 %v2941_v37, %v1181_v59  ;;  %v930_v36 = vpop.f32.mrf.mxu0 }
 0x117   : > { %v1746_v4 = vadd.f32 %v1745_v44, %v1625_v54  ;;  %v1183_v5 = vpop.f32.mrf.mxu1  ;;  %v1628_v13 = vmul.f32 %v2946_v47, %v930_v36 }
 0x118   : > { %v1759_v14 = vadd.f32 %v1758_v50, %v1626_v33  ;;  %v1627_v41 = vmul.f32 %v2950_v53, %v1183_v5  ;;  %v932_v39 = vpop.f32.mrf.mxu0 }
 0x119   : > { %v1734_v52 = vadd.f32 %v1733_v0, %v1628_v13  ;;  %v1187_v46 = vpop.f32.mrf.mxu1  ;;  %v1629_v16 = vmul.f32 %v2955_v60, %v932_v39 }
 0x11a   : > { %v1772_v28 = vadd.f32 %v1771_v63, %v1627_v41  ;;  %v1630_v21 = vmul.f32 %v2959_v3, %v1187_v46  ;;  %v936_v49 = vpop.f32.mrf.mxu0 }
 0x11b   : > { %v1735_v27 = vrot.slane %v1734_v52, 4  ;;  %v1747_v30 = vadd.f32 %v1746_v4, %v1629_v16  ;;  %v1189_v18 = vpop.f32.mrf.mxu1  ;;  %v1632_v0 = vmul.f32 %v2795_v61, %v936_v49 }
 0x11c   : > { %v1760_v32 = vadd.f32 %v1759_v14, %v1630_v21  ;;  %v1631_v34 = vmul.f32 %v2964_v15, %v1189_v18  ;;  %v938_v38 = vpop.f32.mrf.mxu0 }
 0x11d   : > { %v1736_v44 = vadd.f32 %v1735_v27, %v1734_v52  ;;  %v1748_v9 = vrot.slane %v1747_v30, 4  ;;  %v1193_v45 = vpop.f32.mrf.mxu1  ;;  %v1633_v4 = vmul.f32 %v2807_v7, %v938_v38 }
 0x11e   : > { %v1761_v58 = vrot.slane %v1760_v32, 4  ;;  %v1773_v50 = vadd.f32 %v1772_v28, %v1631_v34  ;;  %v942_v55 = vpop.f32.mrf.mxu0  ;;  %v1634_v36 = vmul.f32 %v2801_v1, %v1193_v45 }
 0x11f   : > { %v1737_v43 = vrot.slane %v1736_v44, 2  ;;  %v1749_v11 = vadd.f32 %v1748_v9, %v1747_v30  ;;  %v1195_v59 = vpop.f32.mrf.mxu1  ;;  %v1636_v54 = vmul.f32 %v2798_v62, %v942_v55 }
 0x120   : > { %v1762_v63 = vadd.f32 %v1761_v58, %v1760_v32  ;;  %v1774_v33 = vrot.slane %v1773_v50, 4  ;;  %v944_v5 = vpop.f32.mrf.mxu0  ;;  %v1635_v28 = vmul.f32 %v2819_v26, %v1195_v59 }
 0x121   : > { %v1738_v13 = vadd.f32 %v1737_v43, %v1736_v44  ;;  %v1750_v14 = vrot.slane %v1749_v11, 2  ;;  %v1780_v41 = vadd.f32 %v1636_v54, %v1632_v0  ;;  %v1199_v39 = vpop.f32.mrf.mxu1  ;;  %v1637_v52 = vmul.f32 %v2813_v23, %v944_v5 }
 0x122   : > { %v1763_v46 = vrot.slane %v1762_v63, 2  ;;  %v1775_v16 = vadd.f32 %v1774_v33, %v1773_v50  ;;  %v1638_v21 = vmul.f32 %v2810_v8, %v1199_v39  ;;  %v948_v49 = vpop.f32.mrf.mxu0 }
 0x123   : > { %v1739_v27 = vrot.slane %v1738_v13, 1  ;;  %v1751_v30 = vadd.f32 %v1750_v14, %v1749_v11  ;;  %v1793_v18 = vadd.f32 %v1637_v52, %v1633_v4  ;;  %v1201_v32 = vpop.f32.mrf.mxu1  ;;  %v1640_v34 = vmul.f32 %v2816_v42, %v948_v49 }
 0x124   : > { %v1764_v38 = vadd.f32 %v1763_v46, %v1762_v63  ;;  %v1776_v44 = vrot.slane %v1775_v16, 2  ;;  %v1806_v9 = vadd.f32 %v1638_v21, %v1634_v36  ;;  %v1639_v45 = vmul.f32 %v2822_v10, %v1201_v32  ;;  %v950_v58 = vpop.f32.mrf.mxu0 }
 0x125   : > { %v1752_v55 = vrot.slane %v1751_v30, 1  ;;  %v1781_v43 = vadd.f32 %v1780_v41, %v1640_v34  ;;  %v1205_v50 = vpop.f32.mrf.mxu1  ;;  %v1641_v0 = vmul.f32 %v2835_v25, %v950_v58  ;;  %v2980_v5 = vadd.f32 %v1739_v27, %v1738_v13 }
 0x126   : > { %v1765_v59 = vrot.slane %v1764_v38, 1  ;;  %v1777_v54 = vadd.f32 %v1776_v44, %v1775_v16  ;;  %v1819_v33 = vadd.f32 %v1639_v45, %v1635_v28  ;;  %v1642_v11 = vmul.f32 %v2832_v22, %v1205_v50  ;;  %v954_v4 = vpop.f32.mrf.mxu0 }
 0x127   : > { %v2982_v14 = vadd.f32 %v1752_v55, %v1751_v30  ;;  %v1794_v63 = vadd.f32 %v1793_v18, %v1641_v0  ;;  %v1207_v36 = vpop.f32.mrf.mxu1  ;;  %v1644_v39 = vmul.f32 %v2847_v35, %v954_v4 }
 0x128   : > { %v1778_v52 = vrot.slane %v1777_v54, 1  ;;  %v1807_v46 = vadd.f32 %v1806_v9, %v1642_v11  ;;  %v1643_v41 = vmul.f32 %v2838_v24, %v1207_v36  ;;  %v956_v21 = vpop.f32.mrf.mxu0  ;;  %v2989_v13 = vadd.f32 %v1765_v59, %v1764_v38 }
 0x129   : > { %v1782_v28 = vadd.f32 %v1781_v43, %v1644_v39  ;;  %v1211_v49 = vpop.f32.mrf.mxu1  ;;  %v1645_v32 = vmul.f32 %v2861_v51, %v956_v21 }
 0x12a   : > { %v2991_v27 = vadd.f32 %v1778_v52, %v1777_v54  ;;  %v1820_v30 = vadd.f32 %v1819_v33, %v1643_v41  ;;  %v1646_v18 = vmul.f32 %v2854_v40, %v1211_v49  ;;  %v960_v34 = vpop.f32.mrf.mxu0 }
 0x12b   : > { %v1795_v44 = vadd.f32 %v1794_v63, %v1645_v32  ;;  %v1213_v9 = vpop.f32.mrf.mxu1  ;;  %v1648_v45 = vmul.f32 %v2876_v6, %v960_v34 }
 0x12c   : > { %v1808_v55 = vadd.f32 %v1807_v46, %v1646_v18  ;;  %v1647_v43 = vmul.f32 %v2865_v56, %v1213_v9  ;;  %v962_v50 = vpop.f32.mrf.mxu0 }
 0x12d   : > { %v1783_v0 = vadd.f32 %v1782_v28, %v1648_v45  ;;  %v1217_v38 = vpop.f32.mrf.mxu1  ;;  %v1649_v59 = vmul.f32 %v2889_v19, %v962_v50 }
 0x12e   : > { %v1821_v54 = vadd.f32 %v1820_v30, %v1647_v43  ;;  %v1650_v33 = vmul.f32 %v2895_v31, %v1217_v38  ;;  %v966_v11 = vpop.f32.mrf.mxu0 }
 0x12f   : > { %v1796_v4 = vadd.f32 %v1795_v44, %v1649_v59  ;;  %v1219_v63 = vpop.f32.mrf.mxu1  ;;  %v1652_v36 = vmul.f32 %v2898_v17, %v966_v11 }
 0x130   : > { %v1809_v39 = vadd.f32 %v1808_v55, %v1650_v33  ;;  %v1651_v52 = vmul.f32 %v2907_v48, %v1219_v63  ;;  %v968_v41 = vpop.f32.mrf.mxu0 }
 0x131   : > { %v1784_v46 = vadd.f32 %v1783_v0, %v1652_v36  ;;  %v1223_v21 = vpop.f32.mrf.mxu1  ;;  %v1653_v49 = vmul.f32 %v2913_v57, %v968_v41 }
 0x132   : > { %v1822_v28 = vadd.f32 %v1821_v54, %v1651_v52  ;;  %v1654_v32 = vmul.f32 %v2919_v2, %v1223_v21  ;;  %v972_v18 = vpop.f32.mrf.mxu0 }
 0x133   : > { %v1797_v30 = vadd.f32 %v1796_v4, %v1653_v49  ;;  %v1225_v34 = vpop.f32.mrf.mxu1  ;;  %v1656_v9 = vmul.f32 %v2925_v12, %v972_v18 }
 0x134   : > { %v1810_v44 = vadd.f32 %v1809_v39, %v1654_v32  ;;  %v1655_v45 = vmul.f32 %v2930_v20, %v1225_v34  ;;  %v974_v43 = vpop.f32.mrf.mxu0 }
 0x135   : > { %v1785_v55 = vadd.f32 %v1784_v46, %v1656_v9  ;;  %v1229_v50 = vpop.f32.mrf.mxu1  ;;  %v1657_v38 = vmul.f32 %v2936_v29, %v974_v43 }
 0x136   : > { %v1823_v0 = vadd.f32 %v1822_v28, %v1655_v45  ;;  %v1658_v59 = vmul.f32 %v2941_v37, %v1229_v50  ;;  %v978_v33 = vpop.f32.mrf.mxu0 }
 0x137   : > { %v1231_v54 = vpop.f32.mrf.mxu1  ;;  %v1660_v11 = vmul.f32 %v2946_v47, %v978_v33  ;;  %v1798_v52 = vadd.f32 %v1797_v30, %v1657_v38 }
 0x138   : > { %v1811_v63 = vadd.f32 %v1810_v44, %v1658_v59  ;;  %v1659_v4 = vmul.f32 %v2950_v53, %v1231_v54  ;;  %v980_v36 = vpop.f32.mrf.mxu0 }
 0x139   : > { %v1786_v39 = vadd.f32 %v1785_v55, %v1660_v11  ;;  %v1235_v41 = vpop.f32.mrf.mxu1  ;;  %v1661_v21 = vmul.f32 %v2955_v60, %v980_v36 }
 0x13a   : > { %v1662_v46 = vmul.f32 %v2959_v3, %v1235_v41  ;;  %v3012_v49 = vpop.f32.mrf.mxu0  ;;  %v1824_v34 = vadd.f32 %v1823_v0, %v1659_v4 }
 0x13b   : > { %v1787_v28 = vrot.slane %v1786_v39, 4  ;;  %v1799_v32 = vadd.f32 %v1798_v52, %v1661_v21  ;;  %v1237_v18 = vpop.f32.mrf.mxu1 }
 0x13c   : > { %v1812_v9 = vadd.f32 %v1811_v63, %v1662_v46  ;;  %v1663_v45 = vmul.f32 %v2964_v15, %v1237_v18  ;;  %v986_v44 = vpop.f32.mrf.mxu0 }
 0x13d   : > { %v1788_v43 = vadd.f32 %v1787_v28, %v1786_v39  ;;  %v1800_v50 = vrot.slane %v1799_v32, 4  ;;  %v1241_v59 = vpop.f32.mrf.mxu1 }
 0x13e   : > { %v1813_v30 = vrot.slane %v1812_v9, 4  ;;  %v1825_v55 = vadd.f32 %v1824_v34, %v1663_v45  ;;  %v990_v38 = vpop.f32.mrf.mxu0 }
 0x13f   : > { %v1789_v33 = vrot.slane %v1788_v43, 2  ;;  %v1801_v54 = vadd.f32 %v1800_v50, %v1799_v32  ;;  %v1243_v11 = vpop.f32.mrf.mxu1 }
 0x140   : > { %v1814_v36 = vadd.f32 %v1813_v30, %v1812_v9  ;;  %v1826_v41 = vrot.slane %v1825_v55, 4  ;;  %v992_v58 = vpop.f32.mrf.mxu0 }
 0x141   : > { %v1790_v16 = vadd.f32 %v1789_v33, %v1788_v43  ;;  %v1802_v52 = vrot.slane %v1801_v54, 2  ;;  %v1247_v21 = vpop.f32.mrf.mxu1 }
 0x142   : > { %v1815_v0 = vrot.slane %v1814_v36, 2  ;;  %v1827_v63 = vadd.f32 %v1826_v41, %v1825_v55  ;;  %v996_v4 = vpop.f32.mrf.mxu0 }
 0x143   : > { %v1791_v46 = vrot.slane %v1790_v16, 1  ;;  %v1803_v18 = vadd.f32 %v1802_v52, %v1801_v54  ;;  %v1249_v39 = vpop.f32.mrf.mxu1 }
 0x144   : > { %v1816_v28 = vadd.f32 %v1815_v0, %v1814_v36  ;;  %v1828_v15 = vrot.slane %v1827_v63, 2  ;;  %v998_v60 = vpop.f32.mrf.mxu0 }
 0x145   : > { %v1804_v34 = vrot.slane %v1803_v18, 1  ;;  %v1253_v45 = vpop.f32.mrf.mxu1  ;;  %v1792_v9 = vadd.f32 %v1791_v46, %v1790_v16 }
 0x146   : > { %v1817_v3 = vrot.slane %v1816_v28, 1  ;;  %v1829_v32 = vadd.f32 %v1828_v15, %v1827_v63  ;;  %v1002_v50 = vpop.f32.mrf.mxu0  ;;  %v3177_v15 = vcombine.low %v2980_v5, %v2982_v14  ;;  %v1664_v5 = vmul.f32 %v2795_v61, %v3012_v49 }
 0x147   : > { %v1805_v30 = vadd.f32 %v1804_v34, %v1803_v18  ;;  %v1255_v53 = vpop.f32.mrf.mxu1  ;;  %v1670_v14 = vmul.f32 %v2810_v8, %v1247_v21 }
 0x148   : > { %v1830_v43 = vrot.slane %v1829_v32, 1  ;;  %v1004_v33 = vpop.f32.mrf.mxu0  ;;  %v1818_v55 = vadd.f32 %v1817_v3, %v1816_v28  ;;  %v3179_v28 = vcombine.low %v2989_v13, %v2991_v27  ;;  %v1673_v13 = vmul.f32 %v2835_v25, %v998_v60 }
 0x149   : > { %v1954_v47 = vcombine.low %v1792_v9, %v1805_v30  ;;  %v1259_v29 = vpop.f32.mrf.mxu1  ;;  %v1668_v9 = vmul.f32 %v2798_v62, %v990_v38  ;;  %v1671_v38 = vmul.f32 %v2822_v10, %v1249_v39  ;;  %v1675_v21 = vmul.f32 %v2838_v24, %v1255_v53 }
 0x14a   : > { %v1831_v41 = vadd.f32 %v1830_v43, %v1829_v32  ;;  %v1008_v54 = vpop.f32.mrf.mxu0  ;;  %v1669_v32 = vmul.f32 %v2813_v23, %v992_v58  ;;  %v1666_v58 = vmul.f32 %v2801_v1, %v1241_v59  ;;  %v1677_v39 = vmul.f32 %v2861_v51, %v1004_v33 }
 0x14b   : > { %v1960_v52 = vrot.slane %v1954_v47, 7  ;;  %v1261_v36 = vpop.f32.mrf.mxu1  ;;  %v1678_v60 = vmul.f32 %v2854_v40, %v1259_v29 }
 0x14c   : > { %v1955_v0 = vcombine.low %v1818_v55, %v1831_v41  ;;  %v1010_v37 = vpop.f32.mrf.mxu0  ;;  %v1665_v41 = vmul.f32 %v2807_v7, %v986_v44  ;;  %v1676_v44 = vmul.f32 %v2847_v35, %v1002_v50 }
 0x14d   : > { %v1962_v63 = vsel %vm1961_vm11, %v1960_v52, %v3177_v15  ;;  %v1265_v16 = vpop.f32.mrf.mxu1  ;;  %v1832_v15 = vadd.f32 %v1668_v9, %v1664_v5  ;;  %v1681_v50 = vmul.f32 %v2889_v19, %v1010_v37 }
 0x14e   : > { %v3018_v46 = vsel %vm1963_vm12, %v1960_v52, %v1962_v63  ;;  %v1975_v18 = vrot.slane %v1955_v0, 7  ;;  %v1014_v34 = vpop.f32.mrf.mxu0  ;;  %v1672_v52 = vmul.f32 %v2816_v42, %v996_v4  ;;  %v1667_v0 = vmul.f32 %v2819_v26, %v1243_v11 }
 0x14f   : > { %3178 = vst [vmem:[#allocation12_spill] sm:$0xff] %v3018_v46  ;;  %v1267_v3 = vpop.f32.mrf.mxu1  ;;  %v1674_v63 = vmul.f32 %v2832_v22, %v1253_v45  ;;  %v1858_v4 = vadd.f32 %v1670_v14, %v1666_v58  ;;  %v1680_v11 = vmul.f32 %v2876_v6, %v1008_v54  ;;  %v1682_v53 = vmul.f32 %v2895_v31, %v1265_v16 }
 0x150   : > { %v1976_v47 = vsel %vm1961_vm11, %v1975_v18, %v3179_v28  ;;  %v1016_v30 = vpop.f32.mrf.mxu0  ;;  %v1833_v59 = vadd.f32 %v1832_v15, %v1672_v52  ;;  %v1684_v29 = vmul.f32 %v2898_v17, %v1014_v34  ;;  %v1683_v52 = vmul.f32 %v2907_v48, %v1267_v3 }
 0x151   : > { %v3025_v43 = vsel %vm1963_vm12, %v1975_v18, %v1976_v47  ;;  %v1271_v55 = vpop.f32.mrf.mxu1  ;;  %v1845_v18 = vadd.f32 %v1669_v32, %v1665_v41  ;;  %v1859_v45 = vadd.f32 %v1858_v4, %v1674_v63  ;;  %v1679_v32 = vmul.f32 %v2865_v56, %v1261_v36  ;;  %v3183_v4 = vld [vmem:[#allocation7_spill] sm:$0xff] }
 0x152   : > { %3180 = vst [vmem:[#allocation13_spill] sm:$0xff] %v3025_v43  ;;  %v1020_v27 = vpop.f32.mrf.mxu0  ;;  %v1871_v43 = vadd.f32 %v1671_v38, %v1667_v0  ;;  %v1834_v41 = vadd.f32 %v1833_v59, %v1676_v44  ;;  %v1686_v54 = vmul.f32 %v2919_v2, %v1271_v55 }
 0x153   : > { %v1273_v49 = vpop.f32.mrf.mxu1  ;;  %v1846_v46 = vadd.f32 %v1845_v18, %v1673_v13  ;;  %v1860_v38 = vadd.f32 %v1859_v45, %v1678_v60  ;;  %v1685_v13 = vmul.f32 %v2913_v57, %v1016_v30  ;;  %v1688_v16 = vmul.f32 %v2925_v12, %v1020_v27 }
 0x154   : > { %v1022_v28 = vpop.f32.mrf.mxu0  ;;  %v1872_v33 = vadd.f32 %v1871_v43, %v1675_v21  ;;  %v1835_v36 = vadd.f32 %v1834_v41, %v1680_v11  ;;  %v3181_v21 = vld [vmem:[#allocation6_spill] sm:$0xff]  ;;  %v3184_v41 = vld [vmem:[#allocation8_spill] sm:$0xff] }
 0x155   : > { %v1277_v47 = vpop.f32.mrf.mxu1  ;;  %v1847_v14 = vadd.f32 %v1846_v46, %v1677_v39  ;;  %v1861_v63 = vadd.f32 %v1860_v38, %v1682_v53  ;;  %v1687_v46 = vmul.f32 %v2930_v20, %v1273_v49  ;;  %v3182_v39 = vld [vmem:[#allocation5_spill] sm:$0xff]  ;;  %v3185_v53 = vld [vmem:[#allocation10_spill] sm:$0xff] }
 0x156   : > { %v1026_v9 = vpop.f32.mrf.mxu0  ;;  %v1873_v37 = vadd.f32 %v1872_v33, %v1679_v32  ;;  %v1836_v34 = vadd.f32 %v1835_v36, %v1684_v29  ;;  %v1690_v44 = vmul.f32 %v3181_v21, %v1277_v47  ;;  %v1689_v3 = vmul.f32 %v3182_v39, %v1022_v28  ;;  %v3186_v33 = vld [vmem:[#allocation9_spill] sm:$0xff]  ;;  %v3187_v21 = vld [vmem:[#allocation11_spill] sm:$0xff] }
 0x157   : > { %v1279_v5 = vpop.f32.mrf.mxu1  ;;  %v1848_v43 = vadd.f32 %v1847_v14, %v1681_v50  ;;  %v1692_v55 = vmul.f32 %v3183_v4, %v1026_v9  ;;  %v1862_v59 = vadd.f32 %v1861_v63, %v1686_v54 }
 0x158   : > { %v1028_v58 = vpop.f32.mrf.mxu0  ;;  %v1874_v30 = vadd.f32 %v1873_v37, %v1683_v52  ;;  %v1837_v27 = vadd.f32 %v1836_v34, %v1688_v16  ;;  %v1691_v32 = vmul.f32 %v3184_v41, %v1279_v5 }
 0x159   : > { %v1283_v0 = vpop.f32.mrf.mxu1  ;;  %v1849_v11 = vadd.f32 %v1848_v43, %v1685_v13  ;;  %v1693_v49 = vmul.f32 %v3186_v33, %v1028_v58  ;;  %v1863_v47 = vadd.f32 %v1862_v59, %v1690_v44 }
 0x15a   : > { %v1032_v15 = vpop.f32.mrf.mxu0  ;;  %v1694_v50 = vmul.f32 %v3185_v53, %v1283_v0  ;;  %v1875_v29 = vadd.f32 %v1874_v30, %v1687_v46  ;;  %v1838_v28 = vadd.f32 %v1837_v27, %v1692_v55 }
 0x15b   : > { %v1285_v18 = vpop.f32.mrf.mxu1  ;;  %v1850_v36 = vadd.f32 %v1849_v11, %v1689_v3 }
 0x15c   : > { %v1034_v60 = vpop.f32.mrf.mxu0  ;;  %v1695_v9 = vmul.f32 %v3187_v21, %v1285_v18  ;;  %v1876_v54 = vadd.f32 %v1875_v29, %v1691_v32  ;;  %v1864_v13 = vadd.f32 %v1863_v47, %v1694_v50  ;;  %v1839_v5 = vrot.slane %v1838_v28, 4 }
 0x15d   : > { %v1289_v45 = vpop.f32.mrf.mxu1  ;;  %v1851_v37 = vadd.f32 %v1850_v36, %v1693_v49  ;;  %v1696_v50 = vmul.f32 %v2795_v61, %v1032_v15  ;;  %v1697_v49 = vmul.f32 %v2807_v7, %v1034_v60 }
 0x15e   : > { %v1038_v14 = vpop.f32.mrf.mxu0  ;;  %v1877_v43 = vadd.f32 %v1876_v54, %v1695_v9  ;;  %v1865_v58 = vrot.slane %v1864_v13, 4  ;;  %v3058_v44 = vadd.f32 %v1839_v5, %v1838_v28  ;;  %v1698_v54 = vmul.f32 %v2801_v1, %v1289_v45 }
 0x15f   : > { %v1291_v38 = vpop.f32.mrf.mxu1  ;;  %v1852_v53 = vrot.slane %v1851_v37, 4  ;;  %v1700_v18 = vmul.f32 %v2798_v62, %v1038_v14 }
 0x160   : > { %v1040_v4 = vpop.f32.mrf.mxu0  ;;  %v1878_v3 = vrot.slane %v1877_v43, 4  ;;  %v3061_v11 = vadd.f32 %v1865_v58, %v1864_v13  ;;  %v1841_v28 = vrot.slane %v3058_v44, 2 }
 0x161   : > { %v1295_v52 = vpop.f32.mrf.mxu1  ;;  %v1853_v27 = vadd.f32 %v1852_v53, %v1851_v37  ;;  %v1701_v29 = vmul.f32 %v2813_v23, %v1040_v4  ;;  %v1699_v53 = vmul.f32 %v2819_v26, %v1291_v38  ;;  %v1884_v13 = vadd.f32 %v1700_v18, %v1696_v50 }
 0x162   : > { %v1044_v16 = vpop.f32.mrf.mxu0  ;;  %v1879_v9 = vadd.f32 %v1878_v3, %v1877_v43  ;;  %v1702_v62 = vmul.f32 %v2810_v8, %v1295_v52  ;;  %v1867_v23 = vrot.slane %v3061_v11, 2 }
 0x163   : > { %v1297_v63 = vpop.f32.mrf.mxu1  ;;  %v1704_v47 = vmul.f32 %v2816_v42, %v1044_v16  ;;  %v1854_v42 = vrot.slane %v1853_v27, 2  ;;  %v1897_v1 = vadd.f32 %v1701_v29, %v1697_v49 }
 0x164   : > { %v1046_v0 = vpop.f32.mrf.mxu0  ;;  %v1703_v4 = vmul.f32 %v2822_v10, %v1297_v63  ;;  %v1880_v52 = vrot.slane %v1879_v9, 2 }
 0x165   : > { %v1301_v34 = vpop.f32.mrf.mxu1  ;;  %v1705_v61 = vmul.f32 %v2835_v25, %v1046_v0  ;;  %v1885_v45 = vadd.f32 %v1884_v13, %v1704_v47  ;;  %v1910_v25 = vadd.f32 %v1702_v62, %v1698_v54  ;;  %v1855_v50 = vadd.f32 %v1854_v42, %v1853_v27  ;;  %v3188_v54 = vld [vmem:[#allocation6_spill] sm:$0xff] }
 0x166   : > { %v1050_v46 = vpop.f32.mrf.mxu0  ;;  %v1706_v60 = vmul.f32 %v2832_v22, %v1301_v34  ;;  %v1923_v34 = vadd.f32 %v1703_v4, %v1699_v53  ;;  %v1881_v27 = vadd.f32 %v1880_v52, %v1879_v9 }
 0x167   : > { %v1303_v30 = vpop.f32.mrf.mxu1  ;;  %v1708_v7 = vmul.f32 %v2847_v35, %v1050_v46  ;;  %v1898_v43 = vadd.f32 %v1897_v1, %v1705_v61  ;;  %v1856_v4 = vrot.slane %v1855_v50, 1 }
 0x168   : > { %v1052_v55 = vpop.f32.mrf.mxu0  ;;  %v1707_v35 = vmul.f32 %v2838_v24, %v1303_v30  ;;  %v1911_v58 = vadd.f32 %v1910_v25, %v1706_v60 }
 0x169   : > { %v1307_v59 = vpop.f32.mrf.mxu1  ;;  %v1709_v8 = vmul.f32 %v2861_v51, %v1052_v55  ;;  %v1886_v0 = vadd.f32 %v1885_v45, %v1708_v7  ;;  %v1868_v45 = vadd.f32 %v1867_v23, %v3061_v11 }
 0x16a   : > { %v1056_v32 = vpop.f32.mrf.mxu0  ;;  %v1710_v16 = vmul.f32 %v2854_v40, %v1307_v59  ;;  %v1924_v18 = vadd.f32 %v1923_v34, %v1707_v35  ;;  %v1882_v35 = vrot.slane %v1881_v27, 1 }
 0x16b   : > { %v1309_v36 = vpop.f32.mrf.mxu1  ;;  %v1712_v26 = vmul.f32 %v2876_v6, %v1056_v32  ;;  %v1899_v3 = vadd.f32 %v1898_v43, %v1709_v8  ;;  %v3190_v8 = vld [vmem:[#allocation10_spill] sm:$0xff]  ;;  %v1857_v43 = vadd.f32 %v1856_v4, %v1855_v50 }
 0x16c   : > { %v1058_v14 = vpop.f32.mrf.mxu0  ;;  %v1711_v51 = vmul.f32 %v2865_v56, %v1309_v36  ;;  %v1912_v59 = vadd.f32 %v1911_v58, %v1710_v16  ;;  %v1883_v58 = vadd.f32 %v1882_v35, %v1881_v27 }
 0x16d   : > { %v1313_v15 = vpop.f32.mrf.mxu1  ;;  %v1713_v10 = vmul.f32 %v2889_v19, %v1058_v14  ;;  %v1887_v55 = vadd.f32 %v1886_v0, %v1712_v26  ;;  %v1842_v14 = vadd.f32 %v1841_v28, %v3058_v44 }
 0x16e   : > { %v1062_v37 = vpop.f32.mrf.mxu0  ;;  %v1714_v6 = vmul.f32 %v2895_v31, %v1313_v15  ;;  %v1925_v47 = vadd.f32 %v1924_v18, %v1711_v51 }
 0x16f   : > { %v1315_v38 = vpop.f32.mrf.mxu1  ;;  %v1716_v22 = vmul.f32 %v2898_v17, %v1062_v37  ;;  %v1900_v49 = vadd.f32 %v1899_v3, %v1713_v10 }
 0x170   : > { %v1064_v5 = vpop.f32.mrf.mxu0  ;;  %v1715_v19 = vmul.f32 %v2907_v48, %v1315_v38  ;;  %v1913_v36 = vadd.f32 %v1912_v59, %v1714_v6  ;;  %v1843_v38 = vrot.slane %v1842_v14, 1 }
 0x171   : > { %v1319_v63 = vpop.f32.mrf.mxu1  ;;  %v1717_v24 = vmul.f32 %v2913_v57, %v1064_v5  ;;  %v1888_v56 = vadd.f32 %v1887_v55, %v1716_v22  ;;  %v1869_v22 = vrot.slane %v1868_v45, 1 }
 0x172   : > { %v1068_v46 = vpop.f32.mrf.mxu0  ;;  %v1718_v17 = vmul.f32 %v2919_v2, %v1319_v63  ;;  %v3189_v2 = vld [vmem:[#allocation7_spill] sm:$0xff]  ;;  %v1926_v7 = vadd.f32 %v1925_v47, %v1715_v19  ;;  %v1844_v11 = vadd.f32 %v1843_v38, %v1842_v14 }
 0x173   : > { %v1321_v40 = vpop.f32.mrf.mxu1  ;;  %v1720_v30 = vmul.f32 %v2925_v12, %v1068_v46  ;;  %v1901_v53 = vadd.f32 %v1900_v49, %v1717_v24  ;;  %v1870_v24 = vadd.f32 %v1869_v22, %v1868_v45 }
 0x174   : > { %v1070_v32 = vpop.f32.mrf.mxu0  ;;  %v1719_v57 = vmul.f32 %v2930_v20, %v1321_v40  ;;  %v1914_v15 = vadd.f32 %v1913_v36, %v1718_v17  ;;  %v1956_v46 = vcombine.low %v1844_v11, %v1857_v43 }
 0x175   : > { %v1325_v29 = vpop.f32.mrf.mxu1  ;;  %v1721_v31 = vmul.f32 %v3182_v39, %v1070_v32  ;;  %v1889_v48 = vadd.f32 %v1888_v56, %v1720_v30  ;;  %v1957_v59 = vcombine.low %v1870_v24, %v1883_v58 }
 0x176   : > { %v1722_v62 = vmul.f32 %v3188_v54, %v1325_v29  ;;  %v1074_v12 = vpop.f32.mrf.mxu0  ;;  %v1927_v44 = vadd.f32 %v1926_v7, %v1719_v57  ;;  %v1965_v32 = vrot.slane %v1956_v46, 6  ;;  %v3191_v54 = vld [vmem:[#allocation12_spill] sm:$0xff] }
 0x177   : > { %v1327_v13 = vpop.f32.mrf.mxu1  ;;  %v1724_v61 = vmul.f32 %v3189_v2, %v1074_v12  ;;  %v1902_v60 = vadd.f32 %v1901_v53, %v1721_v31  ;;  %v1978_v47 = vrot.slane %v1957_v59, 6  ;;  %v3192_v2 = vld [vmem:[#allocation13_spill] sm:$0xff] }
 0x178   : > { %v1723_v42 = vmul.f32 %v3184_v41, %v1327_v13  ;;  %v1076_v39 = vpop.f32.mrf.mxu0  ;;  %v1915_v28 = vadd.f32 %v1914_v15, %v1722_v62  ;;  %v1967_v62 = vsel %vm1966_vm13, %v1965_v32, %v3191_v54 }
 0x179   : > { %v1890_v37 = vadd.f32 %v1889_v48, %v1724_v61  ;;  %v1331_v20 = vpop.f32.mrf.mxu1  ;;  %v1725_v1 = vmul.f32 %v3186_v33, %v1076_v39  ;;  %v1969_v13 = vsel %vm1968_vm14, %v1965_v32, %v1967_v62  ;;  %v1979_v61 = vsel %vm1966_vm13, %v1978_v47, %v3192_v2 }
 0x17a   : > { %v1726_v26 = vmul.f32 %v3190_v8, %v1331_v20  ;;  %v1928_v16 = vadd.f32 %v1927_v44, %v1723_v42  ;;  %v1980_v42 = vsel %vm1968_vm14, %v1978_v47, %v1979_v61 }
 0x17b   : > { %v1891_v25 = vrot.slane %v1890_v37, 4  ;;  %v1903_v9 = vadd.f32 %v1902_v60, %v1725_v1  ;;  %v1333_v52 = vpop.f32.mrf.mxu1 }
 0x17c   : > { %v1916_v41 = vadd.f32 %v1915_v28, %v1726_v26  ;;  %v1727_v5 = vmul.f32 %v3187_v21, %v1333_v52 }
 0x17d   : > { %v1892_v0 = vadd.f32 %v1891_v25, %v1890_v37  ;;  %v1904_v10 = vrot.slane %v1903_v9, 4 }
 0x17e   : > { %v1917_v33 = vrot.slane %v1916_v41, 4  ;;  %v1929_v63 = vadd.f32 %v1928_v16, %v1727_v5 }
 0x17f   : > { %v1893_v23 = vrot.slane %v1892_v0, 2  ;;  %v1905_v34 = vadd.f32 %v1904_v10, %v1903_v9 }
 0x180   : > { %v1918_v51 = vadd.f32 %v1917_v33, %v1916_v41  ;;  %v1930_v6 = vrot.slane %v1929_v63, 4 }
 0x181   : > { %v1894_v3 = vadd.f32 %v1893_v23, %v1892_v0  ;;  %v1906_v55 = vrot.slane %v1905_v34, 2 }
 0x182   : > { %v1919_v40 = vrot.slane %v1918_v51, 2  ;;  %v1931_v21 = vadd.f32 %v1930_v6, %v1929_v63 }
 0x183   : > { %v1895_v30 = vrot.slane %v1894_v3, 1  ;;  %v1907_v18 = vadd.f32 %v1906_v55, %v1905_v34 }
 0x184   : > { %v1920_v19 = vadd.f32 %v1919_v40, %v1918_v51  ;;  %v1932_v17 = vrot.slane %v1931_v21, 2 }
 0x185   : > { %v1908_v50 = vrot.slane %v1907_v18, 1  ;;  %v1896_v29 = vadd.f32 %v1895_v30, %v1894_v3 }
 0x186   : > { %v1921_v49 = vrot.slane %v1920_v19, 1  ;;  %v1933_v56 = vadd.f32 %v1932_v17, %v1931_v21 }
 0x187   : > { %v1909_v31 = vadd.f32 %v1908_v50, %v1907_v18 }
 0x188   : > { %v1934_v36 = vrot.slane %v1933_v56, 1  ;;  %v1922_v12 = vadd.f32 %v1921_v49, %v1920_v19 }
 0x189   : > { %v1958_v57 = vcombine.low %v1896_v29, %v1909_v31 }
 0x18a   : > { %v1935_v14 = vadd.f32 %v1934_v36, %v1933_v56 }
 0x18b   : > { %v1970_v53 = vrot.slane %v1958_v57, 5 }
 0x18c   : > { %v1959_v48 = vcombine.low %v1922_v12, %v1935_v14 }
 0x18d   : > { %v1972_v27 = vsel %vm1971_vm15, %v1970_v53, %v1969_v13 }
 0x18e   : > { %v1981_v7 = vrot.slane %v1959_v48, 5  ;;  %v1974_v15 = vsel %vm1973_vm0, %v1970_v53, %v1972_v27 }
 0x18f   : > { %1986 = vst [vmem:[%s176_s7] sm:$0xff] %v1974_v15 }
 0x190   : > { %v1982_v39 = vsel %vm1971_vm15, %v1981_v7, %v1980_v42 }
 0x191   : > { %v1983_v4 = vsel %vm1973_vm0, %v1981_v7, %v1982_v39 }
 0x192   : > { %1987 = vst [vmem:[%s176_s7 + $0x8] sm:$0xff] %v1983_v4 }
 0x193   : > { %2249 = shalt.err (!%p2246_p5)
}
 0x194   : > { %s2250_s26 = scalar_lea.hbm %s3109_s18, 256  ;;  %s2254_s29 = scalar_lea.hbm %s3153_s2, 512 }
 0x195   : > { %p2251_p6 = scmp.ne.s32.totalorder %s3109_s18, %s2250_s26  ;;  %p2255_p10 = scmp.lt.s32.totalorder %s3109_s18, %s3153_s2 }
 0x196   : > { %p2256_p11 = scmp.lt.s32.totalorder %s2254_s29, %s2250_s26 }
 0x197   : > { %p2252_p7 = pnand %p2251_p6, %p2372_p4 }
 0x198   : > { %p2257_p12 = por %p2256_p11, %p2255_p10 }
 0x199   : > { %p2253_p9 = pneg %p2252_p7 }
 0x19b   : > { %p2258_p13 = pnand %p2257_p12, %p2253_p9 }
 0x19d   : > { %2261 = shalt.err (!%p2258_p13)
}
 0x19e   : > { %2179 = dma.vmem_to_hbm [thread:$0]  (%p2372_p4), %s2006_s8, 256, %s3109_s18, %s1989_s20  }
 0x19f PF: > { %p2185_p0 = scmp.ge.s32.totalorder %s2312_s14, 2  ;;  %s2017_s4 = sand.u32 1, %s2292_s9  }
 0x1a0   : > { %s2018_s5 = scalar_lea.sflag [#allocation3], %s2017_s4 }
 0x1a1   : > { %p2182_p1 = pnand %p2185_p0, %p2379_p8 }
 0x1a3   : > { %p2183_p2 = pneg %p2182_p1 }
 0x1a5   : > { %2287 = dma.done.wait (%p2183_p2), %s2018_s5, 256  }
 0x1a6   : > { %2289 = vsyncadd (%p2183_p2), %s2018_s5, 4294967040  ;;  %s15_s14 = sadd.s32 1, %s2312_s14   ;;  %s3193_s9 = smov %s2296_s10 }
 0x1a7   : > { %p12_p3 = scmp.ge.s32.totalorder %s15_s14, 4   ;;  %s3194_s10 = smov %s2300_s11 }
 0x1a8   : > { %s3195_s11 = smov %s2385_s22  ;;  %s3196_s12 = smov %s2308_s13 }
 0x1a9   : > { %s3197_s13 = smov %s3199_s17  ;;  %14 = sbr.rel (!%p12_p3) target bundleno = 4 (0x4), region = 66 }
 0x1ae   :  { %2023 = vsyncpa [#allocation3], 1 }
 0x1af   :  { %2025 = vsyncpa [#allocation3 + $0x1], 1 }

</bundles_post_ra>
